<compile_context>
chip_gen: v6e
topology: v6e:2x2x1
jax: 0.10.0
libtpu: 0.0.40
codegen_flags: <defaults>
</compile_context>

<pallas_src>
import functools

import jax
import jax.numpy as jnp
from jax.experimental import pallas as pl
from jax.experimental.pallas import tpu as pltpu


_LANE = 128      # channel padding granularity (lane width)
_NODE_PAD = 128  # node-count padding granularity


def _round_up(x, m):
    return (x + m - 1) // m * m


def _pad_to(x, rows, cols, value=0.0):
    return jnp.pad(x, ((0, rows - x.shape[0]), (0, cols - x.shape[1])),
                   constant_values=value)


def _tile_sizes(n_p):
    """Pick (row_tile, neighbor_tile) for the (i, k) grid.

    Big neighbor tiles (up to 512) keep the HBM-bound A stream near roofline;
    the row-tile count is kept >= 2 when possible so the 'parallel' axis can
    be split across both TensorCores on v7x.
    """
    tk = max(t for t in (512, 256, 128) if n_p % t == 0)
    tm_opts = [t for t in (256, 128) if n_p % t == 0 and n_p // t >= 2]
    tm = max(tm_opts) if tm_opts else 128
    return tm, tk


# ----------------------------- Pallas kernel --------------------------------

def _sage_layer_kernel(a_ref, x_ref, invdeg_ref, wcat_ref, b_ref,
                       o_ref, acc_ref, *, tm, tk, final, c_real):
    """Fused SAGEConv (+ folded BN + ReLU, or + log_softmax) layer."""
    i = pl.program_id(0)
    k = pl.program_id(1)

    @pl.when(k == 0)
    def _():
        acc_ref[...] = jnp.zeros_like(acc_ref)

    # Partial neighbor sum: acc += A[i, k] @ X[k].
    # A is int8 (0/1) in HBM -> cast to bf16 on the VPU just before the MXU.
    # X is resident in VMEM; slice its k-rows dynamically.
    koff = pl.multiple_of(k * tk, tk)
    a = a_ref[...].astype(jnp.bfloat16)
    xk = x_ref[pl.ds(koff, tk), :]
    acc_ref[...] += jnp.dot(a, xk, preferred_element_type=jnp.float32)

    @pl.when(k == pl.num_programs(1) - 1)
    def _():
        # Mean aggregation (scale by 1/deg), then a single fused epilogue
        # matmul:  [mean_agg | x_self] @ [Wl ; Wr] + b.
        # Eval-mode BatchNorm is already folded into Wl/Wr/b for hidden layers.
        agg = (acc_ref[...] * invdeg_ref[...]).astype(jnp.bfloat16)
        ioff = pl.multiple_of(i * tm, tm)
        xi = x_ref[pl.ds(ioff, tm), :]
        h = jnp.dot(jnp.concatenate([agg, xi], axis=-1), wcat_ref[...],
                    preferred_element_type=jnp.float32) + b_ref[...]
        if final:
            # Mask padded class lanes, then log_softmax.
            col = jax.lax.broadcasted_iota(jnp.int32, h.shape, 1)
            h = jnp.where(col < c_real, h, -1e30)
            m = jnp.max(h, axis=-1, keepdims=True)
            lse = jnp.log(jnp.sum(jnp.exp(h - m), axis=-1, keepdims=True)) + m
            o_ref[...] = (h - lse).astype(o_ref.dtype)
        else:
            o_ref[...] = jnp.maximum(h, 0.0).astype(o_ref.dtype)


# --------------------------- pallas_call wrapper -----------------------------

def _sage_layer(a_p, x_p, invdeg_p, wcat, b, *, final, c_real, out_dtype):
    n_p = a_p.shape[0]
    c2, c_out_p = wcat.shape          # c2 = 2 * c_in_p
    c_in_p = c2 // 2
    tm, tk = _tile_sizes(n_p)
    grid = (n_p // tm, n_p // tk)

    # Deeper prefetch on the single streaming operand (A) once the grid has
    # enough steps to fill a 3-deep pipeline.
    a_pipeline = pl.Buffered(3) if grid[0] * grid[1] >= 4 else None

    a_spec = pl.BlockSpec((tm, tk), lambda i, k: (i, k),
                          pipeline_mode=a_pipeline)
    # X: full-array, constant-index -> DMA'd once, resident in VMEM.
    x_spec = pl.BlockSpec((n_p, c_in_p), lambda i, k: (0, 0))
    d_spec = pl.BlockSpec((tm, 1), lambda i, k: (i, 0))
    w_spec = pl.BlockSpec((c2, c_out_p), lambda i, k: (0, 0))
    b_spec = pl.BlockSpec((1, c_out_p), lambda i, k: (0, 0))
    o_spec = pl.BlockSpec((tm, c_out_p), lambda i, k: (i, 0))

    kernel = functools.partial(_sage_layer_kernel, tm=tm, tk=tk,
                               final=final, c_real=c_real)

    out_bytes = 2 if out_dtype == jnp.bfloat16 else 4
    cost = pl.CostEstimate(
        flops=2 * n_p * n_p * c_in_p + 2 * n_p * c2 * c_out_p,
        transcendentals=(n_p * c_out_p) if final else 0,
        bytes_accessed=(n_p * n_p                 # A (int8, 1 B/elt)
                        + 2 * n_p * c_in_p        # X (bf16, resident: one read)
                        + 2 * c2 * c_out_p        # W_cat (bf16)
                        + 4 * c_out_p             # bias
                        + 4 * n_p                 # 1/deg
                        + out_bytes * n_p * c_out_p),
    )

    return pl.pallas_call(
        kernel,
        out_shape=jax.ShapeDtypeStruct((n_p, c_out_p), out_dtype),
        grid_spec=pltpu.PrefetchScalarGridSpec(
            num_scalar_prefetch=0,
            grid=grid,
            in_specs=[a_spec, x_spec, d_spec, w_spec, b_spec],
            out_specs=o_spec,
            scratch_shapes=[pltpu.VMEM((tm, c_in_p), jnp.float32)],
        ),
        compiler_params=pltpu.CompilerParams(
            dimension_semantics=("parallel", "arbitrary"),
            vmem_limit_bytes=48 * 1024 * 1024,   # headroom for v7x (64 MiB/TC)
        ),
        cost_estimate=cost,
    )(a_p, x_p, invdeg_p, wcat, b)


# --------------------------- model (glue in JAX) ----------------------------

def init_sage_params(key, in_channels, hidden_channels, out_channels, num_layers):
    """Deterministic synthetic parameters mirroring the PyTorch module shapes."""
    dims = [in_channels] + [hidden_channels] * (num_layers - 1) + [out_channels]
    params = []
    for li in range(num_layers):
        c_in, c_out = dims[li], dims[li + 1]
        key, k1, k2, k3 = jax.random.split(key, 4)
        layer = {
            # stored transposed w.r.t. torch.nn.Linear: (c_in, c_out) so x @ W
            "wl": 0.1 * jax.random.normal(k1, (c_in, c_out), jnp.float32),
            "wr": 0.1 * jax.random.normal(k2, (c_in, c_out), jnp.float32),
            "b": 0.05 * jax.random.normal(k3, (1, c_out), jnp.float32),
        }
        if li < num_layers - 1:  # hidden layers carry a BatchNorm1d (eval mode)
            key, k4, k5, k6, k7 = jax.random.split(key, 5)
            layer.update({
                "gamma": 1.0 + 0.1 * jax.random.normal(k4, (1, c_out), jnp.float32),
                "beta": 0.1 * jax.random.normal(k5, (1, c_out), jnp.float32),
                "r_mean": 0.05 * jax.random.normal(k6, (1, c_out), jnp.float32),
                "r_var": 1.0 + 0.1 * jax.random.uniform(k7, (1, c_out), jnp.float32),
            })
        params.append(layer)
    return params


def pack_sage_params(params):
    """Fold eval-mode BN into (Wl, Wr, b), fuse [Wl;Wr] -> W_cat, pad, bf16."""
    eps = 1e-5
    packed = []
    for layer in params:
        wl, wr, b = layer["wl"], layer["wr"], layer["b"]
        if "gamma" in layer:
            scale = layer["gamma"] * jax.lax.rsqrt(layer["r_var"] + eps)
            wl = wl * scale
            wr = wr * scale
            b = (b - layer["r_mean"]) * scale + layer["beta"]
        c_in, c_out = wl.shape
        c_in_p, c_out_p = _round_up(c_in, _LANE), _round_up(c_out, _LANE)
        wl_p = _pad_to(wl, c_in_p, c_out_p)
        wr_p = _pad_to(wr, c_in_p, c_out_p)
        packed.append({
            "wcat": jnp.concatenate([wl_p, wr_p], axis=0).astype(jnp.bfloat16),
            "b": _pad_to(b, 1, c_out_p),
        })
    return packed


@functools.partial(jax.jit, static_argnames=("out_channels",))
def sage_forward(packed_params, x, adj, out_channels):
    n, c_in = x.shape
    n_p = _round_up(n, _NODE_PAD)
    c_in_p = _round_up(c_in, _LANE)

    # Per-row inverse degree (kept as an (N,1) vector; no second NxN array).
    deg = jnp.sum(adj, axis=1, keepdims=True)
    inv_deg_p = _pad_to(1.0 / jnp.maximum(deg, 1.0), n_p, 1)

    # Adjacency stored int8 (0/1): halves the dominant HBM stream on all chips.
    a_p = _pad_to(adj, n_p, n_p).astype(jnp.int8)
    x_p = _pad_to(x, n_p, c_in_p).astype(jnp.bfloat16)

    for layer in packed_params[:-1]:
        x_p = _sage_layer(a_p, x_p, inv_deg_p, layer["wcat"], layer["b"],
                          final=False, c_real=0, out_dtype=jnp.bfloat16)
        # TODO(synk): dropout is identity in eval mode (inference semantics only)

    last = packed_params[-1]
    out_p = _sage_layer(a_p, x_p, inv_deg_p, last["wcat"], last["b"],
                        final=True, c_real=out_channels, out_dtype=jnp.float32)
    return out_p[:n, :out_channels]


def _reference_forward(params, x, adj, out_channels):
    """Pure-JAX reference with EXPLICIT (un-folded) eval-mode BatchNorm.

    Matmul inputs are cast to bf16 to match the kernel's MXU precision; BN is
    applied in f32 after the matmuls so the host-side BN fold is independently
    validated.
    """
    a = adj.astype(jnp.bfloat16)
    h = x.astype(jnp.bfloat16)
    inv_deg = 1.0 / jnp.maximum(jnp.sum(adj, axis=1, keepdims=True), 1.0)

    def conv(xp, layer):
        agg = jnp.dot(a, xp, preferred_element_type=jnp.float32) * inv_deg
        return (jnp.dot(agg.astype(jnp.bfloat16), layer["wl"].astype(jnp.bfloat16),
                        preferred_element_type=jnp.float32)
                + jnp.dot(xp, layer["wr"].astype(jnp.bfloat16),
                          preferred_element_type=jnp.float32)
                + layer["b"])

    for layer in params[:-1]:
        z = conv(h, layer)
        z = ((z - layer["r_mean"]) * jax.lax.rsqrt(layer["r_var"] + 1e-5)
             * layer["gamma"] + layer["beta"])
        h = jnp.maximum(z, 0.0).astype(jnp.bfloat16)

    z = conv(h, params[-1])
    return jax.nn.log_softmax(z, axis=-1)[:, :out_channels]


# ----------------------------------- main -----------------------------------

if __name__ == "__main__":
    N = 200             # number of graph nodes (padded to 256 -> (2, 1) tile grid)
    IN_CH = 8
    HIDDEN = 32
    OUT_CH = 8
    NUM_LAYERS = 3
    DROPOUT = 0.5       # unused in eval mode

    key = jax.random.PRNGKey(0)
    key, kx, ka = jax.random.split(key, 3)

    x = jax.random.normal(kx, (N, IN_CH), jnp.float32)
    # random symmetric 0/1 adjacency (no self-loops), dense
    adj_upper = (jax.random.uniform(ka, (N, N)) < 0.05).astype(jnp.float32)
    adj = jnp.triu(adj_upper, k=1)
    adj = adj + adj.T

    params = init_sage_params(key, IN_CH, HIDDEN, OUT_CH, NUM_LAYERS)
    packed = pack_sage_params(params)

    out = sage_forward(packed, x, adj, out_channels=OUT_CH)
    out = jax.block_until_ready(out)

    assert out.shape == (N, OUT_CH)
    # rows of log_softmax should exponentiate-sum to ~1
    assert jnp.allclose(jnp.sum(jnp.exp(out), axis=-1), 1.0, atol=1e-4)

    # numerical check against a pure-JAX reference with un-folded BatchNorm
    # (validates the host-side BN fold and the fused epilogue).
    ref = _reference_forward(params, x, adj, OUT_CH)
    err = float(jnp.max(jnp.abs(out - ref)))
    assert err < 5e-2, err

    print("KERNEL_OK")
</pallas_src>

<mosaic_0001>
module attributes {stable_mosaic.version = 11 : i64} {
  func.func @_sage_layer_kernel(%arg0: i32, %arg1: i32, %arg2: memref<128x256xi8, #tpu.memory_space<vmem>>, %arg3: memref<256x128xbf16, #tpu.memory_space<vmem>>, %arg4: memref<128x1xf32, #tpu.memory_space<vmem>>, %arg5: memref<256x128xbf16, #tpu.memory_space<vmem>>, %arg6: memref<1x128xf32, #tpu.memory_space<vmem>>, %arg7: memref<128x128xf32, #tpu.memory_space<vmem>>, %arg8: memref<128x128xf32, #tpu.memory_space<vmem>>) attributes {dimension_semantics = [#tpu.dimension_semantics<parallel>, #tpu.dimension_semantics<arbitrary>], iteration_bounds = array<i64: 2, 1>, scalar_prefetch = 0 : i64, scratch_operands = 1 : i64, tpu.core_type = #tpu.core_type<tc>, window_params = [{transform_indices = @transform_0, window_bounds = array<i64: 128, 256>}, {pipeline_mode = #tpu.pipeline_mode<synchronous>, transform_indices = @transform_1, window_bounds = array<i64: 256, 128>}, {transform_indices = @transform_2, window_bounds = array<i64: 128, 1>}, {pipeline_mode = #tpu.pipeline_mode<synchronous>, transform_indices = @transform_3, window_bounds = array<i64: 256, 128>}, {pipeline_mode = #tpu.pipeline_mode<synchronous>, transform_indices = @transform_4, window_bounds = array<i64: 1, 128>}, {transform_indices = @transform_5, window_bounds = array<i64: 128, 128>}]} {
    %c0_i32 = arith.constant 0 : i32
    %0 = arith.cmpi eq, %arg1, %c0_i32 : i32
    %1 = arith.extui %0 : i1 to i32
    %c0_i32_0 = arith.constant 0 : i32
    %2 = arith.cmpi ne, %1, %c0_i32_0 : i32
    scf.if %2 {
      %cst_9 = arith.constant 0.000000e+00 : f32
      %16 = vector.broadcast %cst_9 : f32 to vector<128x128xf32>
      %c0_10 = arith.constant 0 : index
      %c0_11 = arith.constant 0 : index
      %17 = vector.load %arg8[%c0_10, %c0_11] : memref<128x128xf32, #tpu.memory_space<vmem>>, vector<128x128xf32>
      tpu.vector_store %arg8[%c0_10, %c0_11], %16 {strides = array<i32>} : memref<128x128xf32, #tpu.memory_space<vmem>>, vector<128x128xf32>,
    } else {
    }
    %c256_i32 = arith.constant 256 : i32
    %3 = arith.muli %arg1, %c256_i32 : i32
    %4 = tpu.assume_multiple %3, 256 : i32
    %c0 = arith.constant 0 : index
    %c0_1 = arith.constant 0 : index
    %5 = vector.load %arg2[%c0, %c0_1] : memref<128x256xi8, #tpu.memory_space<vmem>>, vector<128x256xi8>
    %6 = arith.sitofp %5 : vector<128x256xi8> to vector<128x256xbf16>
    %7 = arith.index_cast %4 : i32 to index
    %c0_2 = arith.constant 0 : index
    %8 = vector.load %arg3[%7, %c0_2] : memref<256x128xbf16, #tpu.memory_space<vmem>>, vector<256x128xbf16>
    %c0_3 = arith.constant 0 : index
    %c0_4 = arith.constant 0 : index
    %9 = vector.load %arg8[%c0_3, %c0_4] : memref<128x128xf32, #tpu.memory_space<vmem>>, vector<128x128xf32>
    %cst = arith.constant dense<0.000000e+00> : vector<128x128xf32>
    %10 = tpu.matmul %6, %8, %cst {dimension_numbers = #tpu.dot_dimension_numbers<[1], [0], [0], [1], [0, 0, 1, 1], [], []>} : vector<128x256xbf16>, vector<256x128xbf16>, vector<128x128xf32> -> vector<128x128xf32>
    %11 = arith.addf %9, %10 : vector<128x128xf32>
    %c0_5 = arith.constant 0 : index
    %c0_6 = arith.constant 0 : index
    %12 = vector.load %arg8[%c0_5, %c0_6] : memref<128x128xf32, #tpu.memory_space<vmem>>, vector<128x128xf32>
    tpu.vector_store %arg8[%c0_5, %c0_6], %11 {strides = array<i32>} : memref<128x128xf32, #tpu.memory_space<vmem>>, vector<128x128xf32>,
    %c0_i32_7 = arith.constant 0 : i32
    %13 = arith.cmpi eq, %arg1, %c0_i32_7 : i32
    %14 = arith.extui %13 : i1 to i32
    %c0_i32_8 = arith.constant 0 : i32
    %15 = arith.cmpi ne, %14, %c0_i32_8 : i32
    scf.if %15 {
      %c0_9 = arith.constant 0 : index
      %c0_10 = arith.constant 0 : index
      %16 = vector.load %arg8[%c0_9, %c0_10] : memref<128x128xf32, #tpu.memory_space<vmem>>, vector<128x128xf32>
      %c0_11 = arith.constant 0 : index
      %c0_12 = arith.constant 0 : index
      %17 = vector.load %arg4[%c0_11, %c0_12] : memref<128x1xf32, #tpu.memory_space<vmem>>, vector<128x1xf32>
      %18 = vector.broadcast %17 : vector<128x1xf32> to vector<128x128xf32>
      %19 = arith.mulf %16, %18 : vector<128x128xf32>
      %20 = arith.truncf %19 : vector<128x128xf32> to vector<128x128xbf16>
      %c128_i32 = arith.constant 128 : i32
      %21 = arith.muli %arg0, %c128_i32 : i32
      %22 = tpu.assume_multiple %21, 128 : i32
      %23 = arith.index_cast %22 : i32 to index
      %c0_13 = arith.constant 0 : index
      %24 = vector.load %arg3[%23, %c0_13] : memref<256x128xbf16, #tpu.memory_space<vmem>>, vector<128x128xbf16>
      %25 = tpu.concatenate %20, %24 in 1 : vector<128x128xbf16>, vector<128x128xbf16> -> vector<128x256xbf16>
      %c0_14 = arith.constant 0 : index
      %c0_15 = arith.constant 0 : index
      %26 = vector.load %arg5[%c0_14, %c0_15] : memref<256x128xbf16, #tpu.memory_space<vmem>>, vector<256x128xbf16>
      %cst_16 = arith.constant dense<0.000000e+00> : vector<128x128xf32>
      %27 = tpu.matmul %25, %26, %cst_16 {dimension_numbers = #tpu.dot_dimension_numbers<[1], [0], [0], [1], [0, 0, 1, 1], [], []>} : vector<128x256xbf16>, vector<256x128xbf16>, vector<128x128xf32> -> vector<128x128xf32>
      %c0_17 = arith.constant 0 : index
      %c0_18 = arith.constant 0 : index
      %28 = vector.load %arg6[%c0_17, %c0_18] : memref<1x128xf32, #tpu.memory_space<vmem>>, vector<1x128xf32>
      %29 = vector.broadcast %28 : vector<1x128xf32> to vector<128x128xf32>
      %30 = arith.addf %27, %29 : vector<128x128xf32>
      %31 = tpu.iota {dimensions = array<i32: 1>} : vector<128x128xi32>
      %c8_i32 = arith.constant 8 : i32
      %32 = vector.broadcast %c8_i32 : i32 to vector<128x128xi32>
      %33 = arith.cmpi slt, %31, %32 : vector<128x128xi32>
      %cst_19 = arith.constant -1.000000e+30 : f32
      %34 = vector.broadcast %cst_19 : f32 to vector<128x128xf32>
      %35 = arith.select %33, %30, %34 : vector<128x128xi1>, vector<128x128xf32>
      %cst_20 = arith.constant dense<0xFF800000> : vector<128xf32>
      %36 = vector.multi_reduction <maximumf>, %35, %cst_20 [1] : vector<128x128xf32> to vector<128xf32>
      %37 = vector.shape_cast %36 : vector<128xf32> to vector<128x1xf32>
      %38 = vector.broadcast %37 : vector<128x1xf32> to vector<128x128xf32>
      %39 = arith.subf %35, %38 : vector<128x128xf32>
      %40 = math.exp %39 : vector<128x128xf32>
      %cst_21 = arith.constant dense<0.000000e+00> : vector<128xf32>
      %41 = vector.multi_reduction <add>, %40, %cst_21 [1] : vector<128x128xf32> to vector<128xf32>
      %42 = vector.shape_cast %41 : vector<128xf32> to vector<128x1xf32>
      %43 = math.log %42 : vector<128x1xf32>
      %44 = arith.addf %43, %37 : vector<128x1xf32>
      %45 = vector.broadcast %44 : vector<128x1xf32> to vector<128x128xf32>
      %46 = arith.subf %35, %45 : vector<128x128xf32>
      %c0_22 = arith.constant 0 : index
      %c0_23 = arith.constant 0 : index
      %47 = vector.load %arg7[%c0_22, %c0_23] : memref<128x128xf32, #tpu.memory_space<vmem>>, vector<128x128xf32>
      tpu.vector_store %arg7[%c0_22, %c0_23], %46 {strides = array<i32>} : memref<128x128xf32, #tpu.memory_space<vmem>>, vector<128x128xf32>,
    } else {
    }
    return
  }
  func.func @transform_0(%arg0: i32, %arg1: i32) -> (i32, i32) {
    %c0_i32 = arith.constant 0 : i32
    return %arg0, %arg1 : i32, i32
  }
  func.func @transform_1(%arg0: i32, %arg1: i32) -> (i32, i32) {
    %c0_i32 = arith.constant 0 : i32
    %c0_i32_0 = arith.constant 0 : i32
    %c0_i32_1 = arith.constant 0 : i32
    return %c0_i32, %c0_i32_0 : i32, i32
  }
  func.func @transform_2(%arg0: i32, %arg1: i32) -> (i32, i32) {
    %c0_i32 = arith.constant 0 : i32
    %c0_i32_0 = arith.constant 0 : i32
    return %arg0, %c0_i32 : i32, i32
  }
  func.func @transform_3(%arg0: i32, %arg1: i32) -> (i32, i32) {
    %c0_i32 = arith.constant 0 : i32
    %c0_i32_0 = arith.constant 0 : i32
    %c0_i32_1 = arith.constant 0 : i32
    return %c0_i32, %c0_i32_0 : i32, i32
  }
  func.func @transform_4(%arg0: i32, %arg1: i32) -> (i32, i32) {
    %c0_i32 = arith.constant 0 : i32
    %c0_i32_0 = arith.constant 0 : i32
    %c0_i32_1 = arith.constant 0 : i32
    return %c0_i32, %c0_i32_0 : i32, i32
  }
  func.func @transform_5(%arg0: i32, %arg1: i32) -> (i32, i32) {
    %c0_i32 = arith.constant 0 : i32
    %c0_i32_0 = arith.constant 0 : i32
    return %arg0, %c0_i32 : i32, i32
  }
}

module attributes {stable_mosaic.version = 11 : i64} {
  func.func @_sage_layer_kernel(%arg0: i32, %arg1: i32, %arg2: memref<128x256xi8, #tpu.memory_space<vmem>>, %arg3: memref<256x128xbf16, #tpu.memory_space<vmem>>, %arg4: memref<128x1xf32, #tpu.memory_space<vmem>>, %arg5: memref<256x128xbf16, #tpu.memory_space<vmem>>, %arg6: memref<1x128xf32, #tpu.memory_space<vmem>>, %arg7: memref<128x128xbf16, #tpu.memory_space<vmem>>, %arg8: memref<128x128xf32, #tpu.memory_space<vmem>>) attributes {dimension_semantics = [#tpu.dimension_semantics<parallel>, #tpu.dimension_semantics<arbitrary>], iteration_bounds = array<i64: 2, 1>, scalar_prefetch = 0 : i64, scratch_operands = 1 : i64, tpu.core_type = #tpu.core_type<tc>, window_params = [{transform_indices = @transform_0, window_bounds = array<i64: 128, 256>}, {pipeline_mode = #tpu.pipeline_mode<synchronous>, transform_indices = @transform_1, window_bounds = array<i64: 256, 128>}, {transform_indices = @transform_2, window_bounds = array<i64: 128, 1>}, {pipeline_mode = #tpu.pipeline_mode<synchronous>, transform_indices = @transform_3, window_bounds = array<i64: 256, 128>}, {pipeline_mode = #tpu.pipeline_mode<synchronous>, transform_indices = @transform_4, window_bounds = array<i64: 1, 128>}, {transform_indices = @transform_5, window_bounds = array<i64: 128, 128>}]} {
    %c0_i32 = arith.constant 0 : i32
    %0 = arith.cmpi eq, %arg1, %c0_i32 : i32
    %1 = arith.extui %0 : i1 to i32
    %c0_i32_0 = arith.constant 0 : i32
    %2 = arith.cmpi ne, %1, %c0_i32_0 : i32
    scf.if %2 {
      %cst_9 = arith.constant 0.000000e+00 : f32
      %16 = vector.broadcast %cst_9 : f32 to vector<128x128xf32>
      %c0_10 = arith.constant 0 : index
      %c0_11 = arith.constant 0 : index
      %17 = vector.load %arg8[%c0_10, %c0_11] : memref<128x128xf32, #tpu.memory_space<vmem>>, vector<128x128xf32>
      tpu.vector_store %arg8[%c0_10, %c0_11], %16 {strides = array<i32>} : memref<128x128xf32, #tpu.memory_space<vmem>>, vector<128x128xf32>,
    } else {
    }
    %c256_i32 = arith.constant 256 : i32
    %3 = arith.muli %arg1, %c256_i32 : i32
    %4 = tpu.assume_multiple %3, 256 : i32
    %c0 = arith.constant 0 : index
    %c0_1 = arith.constant 0 : index
    %5 = vector.load %arg2[%c0, %c0_1] : memref<128x256xi8, #tpu.memory_space<vmem>>, vector<128x256xi8>
    %6 = arith.sitofp %5 : vector<128x256xi8> to vector<128x256xbf16>
    %7 = arith.index_cast %4 : i32 to index
    %c0_2 = arith.constant 0 : index
    %8 = vector.load %arg3[%7, %c0_2] : memref<256x128xbf16, #tpu.memory_space<vmem>>, vector<256x128xbf16>
    %c0_3 = arith.constant 0 : index
    %c0_4 = arith.constant 0 : index
    %9 = vector.load %arg8[%c0_3, %c0_4] : memref<128x128xf32, #tpu.memory_space<vmem>>, vector<128x128xf32>
    %cst = arith.constant dense<0.000000e+00> : vector<128x128xf32>
    %10 = tpu.matmul %6, %8, %cst {dimension_numbers = #tpu.dot_dimension_numbers<[1], [0], [0], [1], [0, 0, 1, 1], [], []>} : vector<128x256xbf16>, vector<256x128xbf16>, vector<128x128xf32> -> vector<128x128xf32>
    %11 = arith.addf %9, %10 : vector<128x128xf32>
    %c0_5 = arith.constant 0 : index
    %c0_6 = arith.constant 0 : index
    %12 = vector.load %arg8[%c0_5, %c0_6] : memref<128x128xf32, #tpu.memory_space<vmem>>, vector<128x128xf32>
    tpu.vector_store %arg8[%c0_5, %c0_6], %11 {strides = array<i32>} : memref<128x128xf32, #tpu.memory_space<vmem>>, vector<128x128xf32>,
    %c0_i32_7 = arith.constant 0 : i32
    %13 = arith.cmpi eq, %arg1, %c0_i32_7 : i32
    %14 = arith.extui %13 : i1 to i32
    %c0_i32_8 = arith.constant 0 : i32
    %15 = arith.cmpi ne, %14, %c0_i32_8 : i32
    scf.if %15 {
      %c0_9 = arith.constant 0 : index
      %c0_10 = arith.constant 0 : index
      %16 = vector.load %arg8[%c0_9, %c0_10] : memref<128x128xf32, #tpu.memory_space<vmem>>, vector<128x128xf32>
      %c0_11 = arith.constant 0 : index
      %c0_12 = arith.constant 0 : index
      %17 = vector.load %arg4[%c0_11, %c0_12] : memref<128x1xf32, #tpu.memory_space<vmem>>, vector<128x1xf32>
      %18 = vector.broadcast %17 : vector<128x1xf32> to vector<128x128xf32>
      %19 = arith.mulf %16, %18 : vector<128x128xf32>
      %20 = arith.truncf %19 : vector<128x128xf32> to vector<128x128xbf16>
      %c128_i32 = arith.constant 128 : i32
      %21 = arith.muli %arg0, %c128_i32 : i32
      %22 = tpu.assume_multiple %21, 128 : i32
      %23 = arith.index_cast %22 : i32 to index
      %c0_13 = arith.constant 0 : index
      %24 = vector.load %arg3[%23, %c0_13] : memref<256x128xbf16, #tpu.memory_space<vmem>>, vector<128x128xbf16>
      %25 = tpu.concatenate %20, %24 in 1 : vector<128x128xbf16>, vector<128x128xbf16> -> vector<128x256xbf16>
      %c0_14 = arith.constant 0 : index
      %c0_15 = arith.constant 0 : index
      %26 = vector.load %arg5[%c0_14, %c0_15] : memref<256x128xbf16, #tpu.memory_space<vmem>>, vector<256x128xbf16>
      %cst_16 = arith.constant dense<0.000000e+00> : vector<128x128xf32>
      %27 = tpu.matmul %25, %26, %cst_16 {dimension_numbers = #tpu.dot_dimension_numbers<[1], [0], [0], [1], [0, 0, 1, 1], [], []>} : vector<128x256xbf16>, vector<256x128xbf16>, vector<128x128xf32> -> vector<128x128xf32>
      %c0_17 = arith.constant 0 : index
      %c0_18 = arith.constant 0 : index
      %28 = vector.load %arg6[%c0_17, %c0_18] : memref<1x128xf32, #tpu.memory_space<vmem>>, vector<1x128xf32>
      %29 = vector.broadcast %28 : vector<1x128xf32> to vector<128x128xf32>
      %30 = arith.addf %27, %29 : vector<128x128xf32>
      %cst_19 = arith.constant 0.000000e+00 : f32
      %31 = vector.broadcast %cst_19 : f32 to vector<128x128xf32>
      %32 = arith.maximumf %30, %31 : vector<128x128xf32>
      %33 = arith.truncf %32 : vector<128x128xf32> to vector<128x128xbf16>
      %c0_20 = arith.constant 0 : index
      %c0_21 = arith.constant 0 : index
      %34 = vector.load %arg7[%c0_20, %c0_21] : memref<128x128xbf16, #tpu.memory_space<vmem>>, vector<128x128xbf16>
      tpu.vector_store %arg7[%c0_20, %c0_21], %33 {strides = array<i32>} : memref<128x128xbf16, #tpu.memory_space<vmem>>, vector<128x128xbf16>,
    } else {
    }
    return
  }
  func.func @transform_0(%arg0: i32, %arg1: i32) -> (i32, i32) {
    %c0_i32 = arith.constant 0 : i32
    return %arg0, %arg1 : i32, i32
  }
  func.func @transform_1(%arg0: i32, %arg1: i32) -> (i32, i32) {
    %c0_i32 = arith.constant 0 : i32
    %c0_i32_0 = arith.constant 0 : i32
    %c0_i32_1 = arith.constant 0 : i32
    return %c0_i32, %c0_i32_0 : i32, i32
  }
  func.func @transform_2(%arg0: i32, %arg1: i32) -> (i32, i32) {
    %c0_i32 = arith.constant 0 : i32
    %c0_i32_0 = arith.constant 0 : i32
    return %arg0, %c0_i32 : i32, i32
  }
  func.func @transform_3(%arg0: i32, %arg1: i32) -> (i32, i32) {
    %c0_i32 = arith.constant 0 : i32
    %c0_i32_0 = arith.constant 0 : i32
    %c0_i32_1 = arith.constant 0 : i32
    return %c0_i32, %c0_i32_0 : i32, i32
  }
  func.func @transform_4(%arg0: i32, %arg1: i32) -> (i32, i32) {
    %c0_i32 = arith.constant 0 : i32
    %c0_i32_0 = arith.constant 0 : i32
    %c0_i32_1 = arith.constant 0 : i32
    return %c0_i32, %c0_i32_0 : i32, i32
  }
  func.func @transform_5(%arg0: i32, %arg1: i32) -> (i32, i32) {
    %c0_i32 = arith.constant 0 : i32
    %c0_i32_0 = arith.constant 0 : i32
    return %arg0, %c0_i32 : i32, i32
  }
}

</mosaic_0001>

<bundles_post_ra>
// kernel: sage_forward.3
= control target key start
LH: loop header
LB: loop body
LE: loop exit
PB: predicated region body
PF: predicated region fallthrough
CT: control target
= control target key end

     0   :  { %s1614_s18 = smov 0   ;;  %s1616_s19 = smov 0   ;;  %s1827_s0 = inlined_call_operand.vmem [shape: s8[256,256], index: 0, kind: input, shape index: {}]   ;;  %s1828_s1 = inlined_call_operand.vmem [shape: bf16[256,128], index: 1, kind: input, shape index: {}]   ;;  %s1829_s2 = inlined_call_operand.vmem [shape: f32[256,1], index: 2, kind: input, shape index: {}]   ;;  %s1830_s3 = inlined_call_operand.vmem [shape: bf16[256,128], index: 3, kind: input, shape index: {}]   ;;  %s1831_s4 = inlined_call_operand.vmem [shape: f32[1,128], index: 4, kind: input, shape index: {}]   ;;  %s1832_s5 = inlined_call_operand.vmem [shape: bf16[256,128], index: 5, kind: output, shape index: {}]  }
   0x1   :  { %s1618_s20 = smov 0  }
   0x2 LB: > { %s27_s21 = sadd.s32 1, %s1577_s19  ;;  %p1231_p0 = scmp.ge.s32.totalorder %s1581_s20, 1  ;;  %s1581_s20 = sphi %s1618_s20, %s15_s20   ;;  %s1577_s19 = sphi %s1616_s19, %s1834_s19   ;;  %s1573_s18 = sphi %s1614_s18, %s1833_s18  }
   0x3   : > { %p29_p1 = scmp.ge.s32.totalorder %s27_s21, 2  ;;  %p219_p2 = scmp.lt.s32.totalorder %s1581_s20, 3 }
   0x5   : > { %s1836_s21 = smov (%p29_p1, %s27_s21), 0  ;;  %p220_p3 = pnand %p1231_p0, %p219_p2 }
   0x6   : > { %s1232_s24 = sshll.u32 (!%p220_p3), %s1573_s18, 2  ;;  %s1235_s8 = sshll.u32 (!%p220_p3), %s1573_s18, 4 }
   0x7   : > { %223 = sbr.rel (%p220_p3) target bundleno = 514 (0x202), region = 40  ;;  %p259_p4 = scmp.lt.s32.totalorder (!%p220_p3), %s1232_s24, 7 }
   0x8   : > { %p270_p5 = scmp.lt.s32.totalorder (!%p220_p3), %s1235_s8, 31  ;;  %s1255_s9 = sshll.u32 (!%p220_p3), %s1573_s18, 7 }
   0x9   : > { %s744_s12 = sshra.s32 (!%p220_p3), %s1255_s9, 3 }
   0xa   : > { %s1256_s15 = sshll.u32 (!%p220_p3), %s744_s12, 2 }
   0xc   : > { %v1519_v0 = vld [vmem:[%s1828_s1 + $0x78] sm:$0xff]   ;;  %v1521_v2 = vld [vmem:[%s1828_s1 + $0x70] sm:$0xff]   ;;  %v1583_v4 = vmov 0   ;;  %v1523_v5 = vld [vmem:[%s1828_s1 + $0x68] sm:$0xff]   ;;  %s1838_s24 = smov (!%p259_p4, %s1232_s24), 7  ;;  %s1840_s8 = smov (!%p270_p5, %s1235_s8), 31 }
   0xd   : > { %v1520_v1 = vld [vmem:[%s1828_s1 + $0x38] sm:$0xff]   ;;  %1364 = vmatprep.subr.bf16.mxu0 %v1519_v0  ;;  %v1522_v3 = vld [vmem:[%s1828_s1 + $0x30] sm:$0xff]   ;;  %1517 = vset.pattern.permute.xlu0 %v1583_v4  ;;  %v1524_v6 = vld [vmem:[%s1828_s1 + $0x28] sm:$0xff]   ;;  %s1300_s13 = sshll.u32 %s1838_s24, 4  ;;  %s1236_s22 = sshll.u32 %s1840_s8, 3 }
   0xe   : > { %1365 = vmatpush3.bf16.msra.mxu0 %v1520_v1  ;;  %1518 = vset.pattern.permute.xlu1 %v1583_v4  ;;  %v1525_v7 = vld [vmem:[%s1828_s1 + $0x60] sm:$0xff]   ;;  %v1527_v9 = vld [vmem:[%s1828_s1 + $0x58] sm:$0xff]   ;;  %s1669_s26 = scalar_lea.vmem %s1827_s0, %s1300_s13  ;;  %s1677_s30 = scalar_lea.vmem %s1829_s2, %s1236_s22  ;;  %v1529_v11 = vld [vmem:[%s1828_s1 + $0x50] sm:$0xff]  }
   0xf   : > { %1366 = vmatprep.subr.bf16.mxu0 %v1521_v2  ;;  %v1526_v8 = vld [vmem:[%s1828_s1 + $0x20] sm:$0xff]   ;;  %v1528_v10 = vld [vmem:[%s1828_s1 + $0x18] sm:$0xff]   ;;  %v304_v12 = vld [vmem:[%s1669_s26 + $0x8] sm:$0xff]  ;;  %s1773_s22 = scalar_lea.vmem %s1828_s1, %s1256_s15  ;;  %s1238_s25 = sshll.u32 %s1840_s8, 2 }
  0x10   : > { %v312_v13 = vunpack.c.l.s8.bf16 %v304_v12  ;;  %v623_v14 = vld [vmem:[%s1677_s30] sm:$0xff]  ;;  %v1530_v15 = vld [vmem:[%s1828_s1 + $0x10] sm:$0xff]   ;;  %v1531_v17 = vld [vmem:[%s1828_s1 + $0x48] sm:$0xff]   ;;  %v314_v34 = vunpack.c.h.s8.bf16 %v304_v12  ;;  %s1794_s24 = scalar_lea.vmem %s1832_s5, %s1238_s25 }
  0x11   : > { %v625_v16 = vld [vmem:[%s1677_s30 + $0x10] sm:$0xff]  ;;  %641 = vperm.xlu0 %1517, %v623_v14   ;;  %v624_v18 = vld [vmem:[%s1677_s30 + $0x8] sm:$0xff]  ;;  %v626_v19 = vld [vmem:[%s1677_s30 + $0x18] sm:$0xff] }
  0x12   : > { %1367 = vmatpush3.bf16.msra.mxu0 %v1522_v3  ;;  %507 = vmatprep.mubr.bf16.mxu0 %v312_v13  ;;  %v1532_v20 = vld [vmem:[%s1828_s1 + $0x8] sm:$0xff]   ;;  %v1533_v21 = vld [vmem:[%s1828_s1 + $0x40] sm:$0xff]   ;;  %v1535_v24 = vld [vmem:[%s1830_s3 + $0x78] sm:$0xff]  }
  0x13   : > { %1368 = vmatprep.subr.bf16.mxu0 %v1523_v5  ;;  %651 = vperm.xlu1 %1518, %v625_v16   ;;  %v627_v22 = vld [vmem:[%s1677_s30 + $0x20] sm:$0xff]  ;;  %v628_v23 = vld [vmem:[%s1677_s30 + $0x28] sm:$0xff]  ;;  %v1536_v27 = vld [vmem:[%s1830_s3 + $0x38] sm:$0xff]  }
  0x14   : > { %v1534_v25 = vld [vmem:[%s1828_s1] sm:$0xff]   ;;  %1428 = vmatprep.subr.bf16.mxu1 %v1535_v24  ;;  %v1537_v28 = vld [vmem:[%s1830_s3 + $0x70] sm:$0xff]   ;;  %v1539_v31 = vld [vmem:[%s1830_s3 + $0x68] sm:$0xff]  }
  0x15   : > { %646 = vperm.xlu0 %1517, %v624_v18   ;;  %v303_v26 = vld [vmem:[%s1669_s26] sm:$0xff]  ;;  %v629_v29 = vld [vmem:[%s1677_s30 + $0x30] sm:$0xff]  ;;  %1429 = vmatpush3.bf16.msra.mxu1 %v1536_v27  ;;  %v630_v32 = vld [vmem:[%s1677_s30 + $0x38] sm:$0xff] }
  0x16   : > { %1369 = vmatpush3.bf16.msra.mxu0 %v1524_v6  ;;  %v1538_v30 = vld [vmem:[%s1830_s3 + $0x30] sm:$0xff]   ;;  %1430 = vmatprep.subr.bf16.mxu1 %v1537_v28  ;;  %v311_v33 = vunpack.c.l.s8.bf16 %v303_v26  ;;  %v631_v35 = vld [vmem:[%s1677_s30 + $0x40] sm:$0xff]  ;;  %v1540_v36 = vld [vmem:[%s1830_s3 + $0x28] sm:$0xff]   ;;  %v313_v43 = vunpack.c.h.s8.bf16 %v303_v26 }
  0x17   : > { %1370 = vmatprep.subr.bf16.mxu0 %v1525_v7  ;;  %656 = vperm.xlu1 %1518, %v626_v19   ;;  %v1541_v37 = vld [vmem:[%s1830_s3 + $0x60] sm:$0xff]   ;;  %v632_v38 = vld [vmem:[%s1677_s30 + $0x48] sm:$0xff]  ;;  %v306_v39 = vld [vmem:[%s1669_s26 + $0x18] sm:$0xff] }
  0x18   : > { %v633_v40 = vld [vmem:[%s1677_s30 + $0x50] sm:$0xff]  ;;  %v1542_v41 = vld [vmem:[%s1830_s3 + $0x20] sm:$0xff]   ;;  %v1543_v42 = vld [vmem:[%s1830_s3 + $0x58] sm:$0xff]   ;;  %v316_v45 = vunpack.c.l.s8.bf16 %v306_v39  ;;  %v318_v53 = vunpack.c.h.s8.bf16 %v306_v39 }
  0x19   : > { %661 = vperm.xlu0 %1517, %v627_v22   ;;  %1431 = vmatpush3.bf16.msra.mxu1 %v1538_v30  ;;  %v634_v44 = vld [vmem:[%s1677_s30 + $0x58] sm:$0xff]  ;;  %v635_v47 = vld [vmem:[%s1677_s30 + $0x60] sm:$0xff]  ;;  %v636_v48 = vld [vmem:[%s1677_s30 + $0x68] sm:$0xff] }
  0x1a   : > { %1371 = vmatpush3.bf16.msra.mxu0 %v1526_v8  ;;  %1432 = vmatprep.subr.bf16.mxu1 %v1539_v31  ;;  %v1544_v46 = vld [vmem:[%s1830_s3 + $0x18] sm:$0xff]   ;;  %v305_v49 = vld [vmem:[%s1669_s26 + $0x10] sm:$0xff]  ;;  %v308_v54 = vld [vmem:[%s1669_s26 + $0x28] sm:$0xff] }
  0x1b   : > { %1372 = vmatprep.subr.bf16.mxu0 %v1527_v9  ;;  %666 = vperm.xlu1 %1518, %v628_v23   ;;  %v637_v50 = vld [vmem:[%s1677_s30 + $0x70] sm:$0xff]  ;;  %v315_v51 = vunpack.c.l.s8.bf16 %v305_v49  ;;  %v638_v52 = vld [vmem:[%s1677_s30 + $0x78] sm:$0xff]  ;;  %v317_v55 = vunpack.c.h.s8.bf16 %v305_v49  ;;  %v320_v56 = vunpack.c.l.s8.bf16 %v308_v54  ;;  %v307_v57 = vld [vmem:[%s1669_s26 + $0x20] sm:$0xff]  ;;  %v322_v59 = vunpack.c.h.s8.bf16 %v308_v54 }
  0x1c   : > { %v319_v58 = vunpack.c.l.s8.bf16 %v307_v57  ;;  %v310_v60 = vld [vmem:[%s1669_s26 + $0x38] sm:$0xff]  ;;  %v321_v61 = vunpack.c.h.s8.bf16 %v307_v57  ;;  %v309_v63 = vld [vmem:[%s1669_s26 + $0x30] sm:$0xff]  ;;  %v1547_v5 = vld [vmem:[%s1830_s3 + $0x48] sm:$0xff]  }
  0x1d   : > { %671 = vperm.xlu0 %1517, %v629_v29   ;;  %1433 = vmatpush3.bf16.msra.mxu1 %v1540_v36  ;;  %v324_v62 = vunpack.c.l.s8.bf16 %v310_v60  ;;  %v323_v0 = vunpack.c.l.s8.bf16 %v309_v63  ;;  %v326_v1 = vunpack.c.h.s8.bf16 %v310_v60  ;;  %v325_v2 = vunpack.c.h.s8.bf16 %v309_v63  ;;  %v1545_v3 = vld [vmem:[%s1830_s3 + $0x50] sm:$0xff]   ;;  %v1548_v6 = vld [vmem:[%s1830_s3 + $0x8] sm:$0xff]   ;;  %v1549_v7 = vld [vmem:[%s1830_s3 + $0x40] sm:$0xff]  }
  0x1e   : > { %1373 = vmatpush3.bf16.msra.mxu0 %v1528_v10  ;;  %1434 = vmatprep.subr.bf16.mxu1 %v1541_v37  ;;  %v1546_v4 = vld [vmem:[%s1830_s3 + $0x10] sm:$0xff]   ;;  %v1550_v8 = vld [vmem:[%s1830_s3] sm:$0xff]   ;;  %v1552_v23 = vld [vmem:[%s1773_s22 + $0x8] sm:$0xff]  }
  0x1f   : > { %1374 = vmatprep.subr.bf16.mxu0 %v1529_v11  ;;  %676 = vperm.xlu1 %1518, %v630_v32   ;;  %v1551_v9 = vld [vmem:[%s1773_s22] sm:$0xff]  }
  0x20   : > { %979 = vmatprep.mubr.bf16.mxu1 %v1551_v9 }
  0x21   : > { %681 = vperm.xlu0 %1517, %v631_v35   ;;  %1435 = vmatpush3.bf16.msra.mxu1 %v1542_v41 }
  0x22   : > { %1375 = vmatpush3.bf16.msra.mxu0 %v1530_v15  ;;  %1436 = vmatprep.subr.bf16.mxu1 %v1543_v42 }
  0x23   : > { %1376 = vmatprep.subr.bf16.mxu0 %v1531_v17  ;;  %686 = vperm.xlu1 %1518, %v632_v38  }
  0x25   : > { %691 = vperm.xlu0 %1517, %v633_v40   ;;  %1437 = vmatpush3.bf16.msra.mxu1 %v1544_v46  ;;  %v1554_v46 = vld [vmem:[%s1773_s22 + $0x18] sm:$0xff]  }
  0x26   : > { %1377 = vmatpush3.bf16.msra.mxu0 %v1532_v20  ;;  %1438 = vmatprep.subr.bf16.mxu1 %v1545_v3 }
  0x27   : > { %1378 = vmatprep.subr.bf16.mxu0 %v1533_v21  ;;  %696 = vperm.xlu1 %1518, %v634_v44  }
  0x29   : > { %701 = vperm.xlu0 %1517, %v635_v47   ;;  %1439 = vmatpush3.bf16.msra.mxu1 %v1546_v4 }
  0x2a   : > { %1379 = vmatpush3.bf16.msra.mxu0 %v1534_v25  ;;  %1440 = vmatprep.subr.bf16.mxu1 %v1547_v5 }
  0x2b   : > { %706 = vperm.xlu1 %1518, %v636_v48  }
  0x2d   : > { %508 = vmatmul.mubr.bf16.vlgmr.msra.gmra.mxu0 %v311_v33  ;;  %711 = vperm.xlu0 %1517, %v637_v50  }
  0x2e   : > { %515 = vmatprep.mubr.bf16.mxu0 %v314_v34  ;;  %1441 = vmatpush3.bf16.msra.mxu1 %v1548_v6  ;;  %v1553_v34 = vld [vmem:[%s1773_s22 + $0x10] sm:$0xff]   ;;  %v1556_v6 = vld [vmem:[%s1773_s22 + $0x28] sm:$0xff]  }
  0x2f   : > { %716 = vperm.xlu1 %1518, %v638_v52   ;;  %1442 = vmatprep.subr.bf16.mxu1 %v1549_v7 }
  0x32   : > { %1443 = vmatpush3.bf16.msra.mxu1 %v1550_v8 }
  0x35   : > { %516 = vmatmul.mubr.bf16.gmra.mxu0 %v313_v43 }
  0x36   : > { %523 = vmatprep.mubr.bf16.mxu0 %v316_v45 }
  0x3d   : > { %524 = vmatmul.mubr.bf16.gmra.mxu0 %v315_v51 }
  0x3e   : > { %531 = vmatprep.mubr.bf16.mxu0 %v318_v53 }
  0x45   : > { %532 = vmatmul.mubr.bf16.gmra.mxu0 %v317_v55 }
  0x46   : > { %539 = vmatprep.mubr.bf16.mxu0 %v320_v56 }
  0x4d   : > { %540 = vmatmul.mubr.bf16.gmra.mxu0 %v319_v58  ;;  %v1555_v58 = vld [vmem:[%s1773_s22 + $0x20] sm:$0xff]  }
  0x4e   : > { %547 = vmatprep.mubr.bf16.mxu0 %v322_v59 }
  0x55   : > { %548 = vmatmul.mubr.bf16.gmra.mxu0 %v321_v61 }
  0x56   : > { %555 = vmatprep.mubr.bf16.mxu0 %v324_v62 }
  0x5d   : > { %556 = vmatmul.mubr.bf16.gmra.mxu0 %v323_v0 }
  0x5e   : > { %563 = vmatprep.mubr.bf16.mxu0 %v326_v1 }
  0x65   : > { %564 = vmatmul.mubr.bf16.gmra.mxu0 %v325_v2 }
  0x8c   : > { %v642_v11 = vpop.permute.xlu0 %641 }
  0x8e   : > { %v652_v21 = vpop.permute.xlu1 %651 }
  0x90   : > { %v647_v17 = vpop.permute.xlu0 %646 }
  0x92   : > { %v657_v29 = vpop.permute.xlu1 %656 }
  0x94   : > { %v662_v39 = vpop.permute.xlu0 %661 }
  0x96   : > { %v667_v41 = vpop.permute.xlu1 %666 }
  0x98   : > { %v672_v51 = vpop.permute.xlu0 %671 }
  0x9a   : > { %v677_v53 = vpop.permute.xlu1 %676 }
  0x9c   : > { %v682_v63 = vpop.permute.xlu0 %681 }
  0x9e   : > { %v687_v1 = vpop.permute.xlu1 %686 }
  0xed   : > { %v1380_v10 = vpop.f32.mrf.mxu0 }
  0xef   : > { %v1381_v12 = vpop.f32.mrf.mxu0 }
  0xf0   : > { %v1382_v14 = vadd.f32 %v1381_v12, %v1380_v10 }
  0xf1   : > { %v1383_v13 = vpop.f32.mrf.mxu0 }
  0xf2   : > { %v719_v19 = vmul.f32 %v1382_v14, %v642_v11  ;;  %v692_v11 = vpop.permute.xlu0 %691 }
  0xf3   : > { %v1384_v15 = vpop.f32.mrf.mxu0 }
  0xf4   : > { %v1385_v16 = vadd.f32 %v1384_v15, %v1383_v13  ;;  %v697_v13 = vpop.permute.xlu1 %696 }
  0xf5   : > { %v1386_v18 = vpop.f32.mrf.mxu0 }
  0xf6   : > { %v720_v20 = vmul.f32 %v1385_v16, %v647_v17 }
  0xf7   : > { %v1387_v22 = vpop.f32.mrf.mxu0 }
  0xf8   : > { %v735_v24 = vpack.c.bf16 %v720_v20, %v719_v19  ;;  %v1388_v26 = vadd.f32 %v1387_v22, %v1386_v18  ;;  %v1557_v18 = vld [vmem:[%s1773_s22 + $0x30] sm:$0xff]  }
  0xf9   : > { %v1389_v25 = vpop.f32.mrf.mxu0 }
  0xfa   : > { %980 = vmatmul.mubr.bf16.vlgmr.msra.gmra.mxu1 %v735_v24  ;;  %v721_v31 = vmul.f32 %v1388_v26, %v652_v21 }
  0xfb   : > { %v1390_v27 = vpop.f32.mrf.mxu0  ;;  %987 = vmatprep.mubr.bf16.mxu1 %v1552_v23  ;;  %v702_v23 = vpop.permute.xlu0 %701 }
  0xfc   : > { %v1391_v28 = vadd.f32 %v1390_v27, %v1389_v25  ;;  %v707_v25 = vpop.permute.xlu1 %706 }
  0xfd   : > { %v1392_v30 = vpop.f32.mrf.mxu0 }
  0xfe   : > { %v722_v32 = vmul.f32 %v1391_v28, %v657_v29 }
  0xff   : > { %v1393_v33 = vpop.f32.mrf.mxu0 }
 0x100   : > { %v736_v35 = vpack.c.bf16 %v722_v32, %v721_v31  ;;  %v1394_v37 = vadd.f32 %v1393_v33, %v1392_v30  ;;  %v1558_v30 = vld [vmem:[%s1773_s22 + $0x38] sm:$0xff]  }
 0x101   : > { %v1395_v36 = vpop.f32.mrf.mxu0 }
 0x102   : > { %988 = vmatmul.mubr.bf16.gmra.mxu1 %v736_v35  ;;  %v723_v43 = vmul.f32 %v1394_v37, %v662_v39  ;;  %v717_v37 = vpop.permute.xlu1 %716 }
 0x103   : > { %v1396_v38 = vpop.f32.mrf.mxu0  ;;  %995 = vmatprep.mubr.bf16.mxu1 %v1553_v34 }
 0x104   : > { %v1397_v40 = vadd.f32 %v1396_v38, %v1395_v36  ;;  %v712_v36 = vpop.permute.xlu0 %711 }
 0x105   : > { %v1398_v42 = vpop.f32.mrf.mxu0 }
 0x106   : > { %v724_v44 = vmul.f32 %v1397_v40, %v667_v41 }
 0x107   : > { %v1399_v45 = vpop.f32.mrf.mxu0 }
 0x108   : > { %v737_v47 = vpack.c.bf16 %v724_v44, %v723_v43  ;;  %v1400_v49 = vadd.f32 %v1399_v45, %v1398_v42  ;;  %v1786_v44 = vld [vmem:[%s1831_s4] ss:$0 sm:$0xff] }
 0x109   : > { %v1401_v48 = vpop.f32.mrf.mxu0 }
 0x10a   : > { %996 = vmatmul.mubr.bf16.gmra.mxu1 %v737_v47  ;;  %v725_v55 = vmul.f32 %v1400_v49, %v672_v51 }
 0x10b   : > { %v1402_v50 = vpop.f32.mrf.mxu0  ;;  %1003 = vmatprep.mubr.bf16.mxu1 %v1554_v46 }
 0x10c   : > { %v1403_v52 = vadd.f32 %v1402_v50, %v1401_v48 }
 0x10d   : > { %v1404_v54 = vpop.f32.mrf.mxu0 }
 0x10e   : > { %v726_v56 = vmul.f32 %v1403_v52, %v677_v53 }
 0x10f   : > { %v1405_v57 = vpop.f32.mrf.mxu0 }
 0x110   : > { %v738_v59 = vpack.c.bf16 %v726_v56, %v725_v55  ;;  %v1406_v61 = vadd.f32 %v1405_v57, %v1404_v54 }
 0x111   : > { %v1407_v60 = vpop.f32.mrf.mxu0 }
 0x112   : > { %1004 = vmatmul.mubr.bf16.gmra.mxu1 %v738_v59  ;;  %v727_v3 = vmul.f32 %v1406_v61, %v682_v63 }
 0x113   : > { %v1408_v62 = vpop.f32.mrf.mxu0  ;;  %1011 = vmatprep.mubr.bf16.mxu1 %v1555_v58 }
 0x114   : > { %v1409_v0 = vadd.f32 %v1408_v62, %v1407_v60 }
 0x115   : > { %v1410_v2 = vpop.f32.mrf.mxu0 }
 0x116   : > { %v728_v4 = vmul.f32 %v1409_v0, %v687_v1 }
 0x117   : > { %v1411_v5 = vpop.f32.mrf.mxu0 }
 0x118   : > { %v739_v7 = vpack.c.bf16 %v728_v4, %v727_v3  ;;  %v1412_v9 = vadd.f32 %v1411_v5, %v1410_v2 }
 0x119   : > { %v1413_v8 = vpop.f32.mrf.mxu0 }
 0x11a   : > { %1012 = vmatmul.mubr.bf16.gmra.mxu1 %v739_v7  ;;  %v729_v15 = vmul.f32 %v1412_v9, %v692_v11 }
 0x11b   : > { %v1414_v10 = vpop.f32.mrf.mxu0  ;;  %1019 = vmatprep.mubr.bf16.mxu1 %v1556_v6 }
 0x11c   : > { %v1415_v12 = vadd.f32 %v1414_v10, %v1413_v8 }
 0x11d   : > { %v1416_v14 = vpop.f32.mrf.mxu0 }
 0x11e   : > { %v730_v16 = vmul.f32 %v1415_v12, %v697_v13 }
 0x11f   : > { %v1417_v17 = vpop.f32.mrf.mxu0 }
 0x120   : > { %v740_v19 = vpack.c.bf16 %v730_v16, %v729_v15  ;;  %v1418_v21 = vadd.f32 %v1417_v17, %v1416_v14 }
 0x121   : > { %v1419_v20 = vpop.f32.mrf.mxu0 }
 0x122   : > { %1020 = vmatmul.mubr.bf16.gmra.mxu1 %v740_v19  ;;  %v731_v27 = vmul.f32 %v1418_v21, %v702_v23 }
 0x123   : > { %v1420_v22 = vpop.f32.mrf.mxu0  ;;  %1027 = vmatprep.mubr.bf16.mxu1 %v1557_v18 }
 0x124   : > { %v1421_v24 = vadd.f32 %v1420_v22, %v1419_v20 }
 0x125   : > { %v1422_v26 = vpop.f32.mrf.mxu0 }
 0x126   : > { %v732_v28 = vmul.f32 %v1421_v24, %v707_v25 }
 0x127   : > { %v1423_v29 = vpop.f32.mrf.mxu0 }
 0x128   : > { %v741_v31 = vpack.c.bf16 %v732_v28, %v731_v27  ;;  %v1424_v33 = vadd.f32 %v1423_v29, %v1422_v26 }
 0x129   : > { %v1425_v32 = vpop.f32.mrf.mxu0 }
 0x12a   : > { %1028 = vmatmul.mubr.bf16.gmra.mxu1 %v741_v31  ;;  %v733_v38 = vmul.f32 %v1424_v33, %v712_v36 }
 0x12b   : > { %v1426_v34 = vpop.f32.mrf.mxu0  ;;  %1035 = vmatprep.mubr.bf16.mxu1 %v1558_v30 }
 0x12c   : > { %v1427_v35 = vadd.f32 %v1426_v34, %v1425_v32 }
 0x12e   : > { %v734_v39 = vmul.f32 %v1427_v35, %v717_v37 }
 0x130   : > { %v742_v40 = vpack.c.bf16 %v734_v39, %v733_v38 }
 0x132   : > { %1036 = vmatmul.mubr.bf16.gmra.mxu1 %v742_v40 }
 0x1ba   : > { %v1444_v41 = vpop.f32.mrf.mxu1 }
 0x1bc   : > { %v1445_v42 = vpop.f32.mrf.mxu1 }
 0x1bd   : > { %v1446_v43 = vadd.f32 %v1445_v42, %v1444_v41 }
 0x1be   : > { %v1447_v45 = vpop.f32.mrf.mxu1 }
 0x1bf   : > { %v982_v47 = vadd.f32 %v1446_v43, %v1786_v44 }
 0x1c0   : > { %v1448_v46 = vpop.f32.mrf.mxu1 }
 0x1c1   : > { %v1449_v48 = vadd.f32 %v1448_v46, %v1447_v45  ;;  %v1044_v52 = vmax.f32 %v982_v47, 0.0 }
 0x1c2   : > { %v1450_v49 = vpop.f32.mrf.mxu1 }
 0x1c3   : > { %v985_v50 = vadd.f32 %v1449_v48, %v1786_v44 }
 0x1c4   : > { %v1451_v51 = vpop.f32.mrf.mxu1 }
 0x1c5   : > { %v1045_v53 = vmax.f32 %v985_v50, 0.0  ;;  %v1452_v54 = vadd.f32 %v1451_v51, %v1450_v49 }
 0x1c6   : > { %v1453_v55 = vpop.f32.mrf.mxu1 }
 0x1c7   : > { %v1320_v56 = vpack.c.bf16 %v1045_v53, %v1044_v52  ;;  %v990_v58 = vadd.f32 %v1452_v54, %v1786_v44 }
 0x1c8   : > { %v1454_v57 = vpop.f32.mrf.mxu1 }
 0x1c9   : > { %1321 = vst [vmem:[%s1794_s24] sm:$0xff] %v1320_v56   ;;  %v1455_v59 = vadd.f32 %v1454_v57, %v1453_v55  ;;  %v1046_v63 = vmax.f32 %v990_v58, 0.0 }
 0x1ca   : > { %v1456_v60 = vpop.f32.mrf.mxu1 }
 0x1cb   : > { %v993_v61 = vadd.f32 %v1455_v59, %v1786_v44 }
 0x1cc   : > { %v1457_v62 = vpop.f32.mrf.mxu1 }
 0x1cd   : > { %v1047_v0 = vmax.f32 %v993_v61, 0.0  ;;  %v1458_v1 = vadd.f32 %v1457_v62, %v1456_v60 }
 0x1ce   : > { %v1459_v2 = vpop.f32.mrf.mxu1 }
 0x1cf   : > { %v1325_v3 = vpack.c.bf16 %v1047_v0, %v1046_v63  ;;  %v998_v5 = vadd.f32 %v1458_v1, %v1786_v44 }
 0x1d0   : > { %v1460_v4 = vpop.f32.mrf.mxu1 }
 0x1d1   : > { %1357 = vst [vmem:[%s1794_s24 + $0x8] sm:$0xff] %v1325_v3   ;;  %v1461_v6 = vadd.f32 %v1460_v4, %v1459_v2  ;;  %v1048_v10 = vmax.f32 %v998_v5, 0.0 }
 0x1d2   : > { %v1462_v7 = vpop.f32.mrf.mxu1 }
 0x1d3   : > { %v1001_v8 = vadd.f32 %v1461_v6, %v1786_v44 }
 0x1d4   : > { %v1463_v9 = vpop.f32.mrf.mxu1 }
 0x1d5   : > { %v1049_v11 = vmax.f32 %v1001_v8, 0.0  ;;  %v1464_v12 = vadd.f32 %v1463_v9, %v1462_v7 }
 0x1d6   : > { %v1465_v13 = vpop.f32.mrf.mxu1 }
 0x1d7   : > { %v1330_v14 = vpack.c.bf16 %v1049_v11, %v1048_v10  ;;  %v1006_v16 = vadd.f32 %v1464_v12, %v1786_v44 }
 0x1d8   : > { %v1466_v15 = vpop.f32.mrf.mxu1 }
 0x1d9   : > { %1358 = vst [vmem:[%s1794_s24 + $0x10] sm:$0xff] %v1330_v14   ;;  %v1467_v17 = vadd.f32 %v1466_v15, %v1465_v13  ;;  %v1050_v21 = vmax.f32 %v1006_v16, 0.0 }
 0x1da   : > { %v1468_v18 = vpop.f32.mrf.mxu1 }
 0x1db   : > { %v1009_v19 = vadd.f32 %v1467_v17, %v1786_v44 }
 0x1dc   : > { %v1469_v20 = vpop.f32.mrf.mxu1 }
 0x1dd   : > { %v1051_v22 = vmax.f32 %v1009_v19, 0.0  ;;  %v1470_v23 = vadd.f32 %v1469_v20, %v1468_v18 }
 0x1de   : > { %v1471_v24 = vpop.f32.mrf.mxu1 }
 0x1df   : > { %v1335_v25 = vpack.c.bf16 %v1051_v22, %v1050_v21  ;;  %v1014_v27 = vadd.f32 %v1470_v23, %v1786_v44 }
 0x1e0   : > { %v1472_v26 = vpop.f32.mrf.mxu1 }
 0x1e1   : > { %1359 = vst [vmem:[%s1794_s24 + $0x18] sm:$0xff] %v1335_v25   ;;  %v1473_v28 = vadd.f32 %v1472_v26, %v1471_v24  ;;  %v1052_v32 = vmax.f32 %v1014_v27, 0.0 }
 0x1e2   : > { %v1474_v29 = vpop.f32.mrf.mxu1 }
 0x1e3   : > { %v1017_v30 = vadd.f32 %v1473_v28, %v1786_v44 }
 0x1e4   : > { %v1475_v31 = vpop.f32.mrf.mxu1 }
 0x1e5   : > { %v1053_v33 = vmax.f32 %v1017_v30, 0.0  ;;  %v1476_v34 = vadd.f32 %v1475_v31, %v1474_v29 }
 0x1e6   : > { %v1477_v35 = vpop.f32.mrf.mxu1 }
 0x1e7   : > { %v1340_v36 = vpack.c.bf16 %v1053_v33, %v1052_v32  ;;  %v1022_v38 = vadd.f32 %v1476_v34, %v1786_v44 }
 0x1e8   : > { %v1478_v37 = vpop.f32.mrf.mxu1 }
 0x1e9   : > { %1360 = vst [vmem:[%s1794_s24 + $0x20] sm:$0xff] %v1340_v36   ;;  %v1479_v39 = vadd.f32 %v1478_v37, %v1477_v35  ;;  %v1054_v43 = vmax.f32 %v1022_v38, 0.0 }
 0x1ea   : > { %v1480_v40 = vpop.f32.mrf.mxu1 }
 0x1eb   : > { %v1025_v41 = vadd.f32 %v1479_v39, %v1786_v44 }
 0x1ec   : > { %v1481_v42 = vpop.f32.mrf.mxu1 }
 0x1ed   : > { %v1055_v45 = vmax.f32 %v1025_v41, 0.0  ;;  %v1482_v46 = vadd.f32 %v1481_v42, %v1480_v40 }
 0x1ee   : > { %v1483_v47 = vpop.f32.mrf.mxu1 }
 0x1ef   : > { %v1345_v48 = vpack.c.bf16 %v1055_v45, %v1054_v43  ;;  %v1030_v50 = vadd.f32 %v1482_v46, %v1786_v44 }
 0x1f0   : > { %v1484_v49 = vpop.f32.mrf.mxu1 }
 0x1f1   : > { %1361 = vst [vmem:[%s1794_s24 + $0x28] sm:$0xff] %v1345_v48   ;;  %v1485_v51 = vadd.f32 %v1484_v49, %v1483_v47  ;;  %v1056_v55 = vmax.f32 %v1030_v50, 0.0 }
 0x1f2   : > { %v1486_v52 = vpop.f32.mrf.mxu1 }
 0x1f3   : > { %v1033_v53 = vadd.f32 %v1485_v51, %v1786_v44 }
 0x1f4   : > { %v1487_v54 = vpop.f32.mrf.mxu1 }
 0x1f5   : > { %v1057_v56 = vmax.f32 %v1033_v53, 0.0  ;;  %v1488_v57 = vadd.f32 %v1487_v54, %v1486_v52 }
 0x1f6   : > { %v1489_v58 = vpop.f32.mrf.mxu1 }
 0x1f7   : > { %v1350_v59 = vpack.c.bf16 %v1057_v56, %v1056_v55  ;;  %v1038_v61 = vadd.f32 %v1488_v57, %v1786_v44 }
 0x1f8   : > { %v1490_v60 = vpop.f32.mrf.mxu1 }
 0x1f9   : > { %1362 = vst [vmem:[%s1794_s24 + $0x30] sm:$0xff] %v1350_v59   ;;  %v1491_v62 = vadd.f32 %v1490_v60, %v1489_v58  ;;  %v1058_v0 = vmax.f32 %v1038_v61, 0.0 }
 0x1fb   : > { %v1041_v63 = vadd.f32 %v1491_v62, %v1786_v44 }
 0x1fd   : > { %v1059_v1 = vmax.f32 %v1041_v63, 0.0 }
 0x1ff   : > { %v1355_v2 = vpack.c.bf16 %v1059_v1, %v1058_v0 }
 0x201   : > { %1363 = vst [vmem:[%s1794_s24 + $0x38] sm:$0xff] %v1355_v2  }
 0x202 PF: > { %s15_s20 = sadd.s32 1, %s1581_s20   ;;  %s1833_s18 = smov %s1577_s19 }
 0x203   : > { %p12_p6 = scmp.ge.s32.totalorder %s15_s20, 4   ;;  %s1834_s19 = smov %s1836_s21 }
 0x205   :  { %14 = sbr.rel (!%p12_p6) target bundleno = 2 (0x2), region = 83 }

// kernel: sage_forward.5
= control target key start
LH: loop header
LB: loop body
LE: loop exit
PB: predicated region body
PF: predicated region fallthrough
CT: control target
= control target key end

     0   :  { %s1714_s18 = smov 0   ;;  %s1716_s19 = smov 0   ;;  %s2117_s0 = inlined_call_operand.vmem [shape: s8[256,256], index: 0, kind: input, shape index: {}]   ;;  %s2118_s1 = inlined_call_operand.vmem [shape: bf16[256,128], index: 1, kind: input, shape index: {}]   ;;  %s2119_s2 = inlined_call_operand.vmem [shape: f32[256,1], index: 2, kind: input, shape index: {}]   ;;  %s2120_s3 = inlined_call_operand.vmem [shape: bf16[256,128], index: 3, kind: input, shape index: {}]   ;;  %s2121_s4 = inlined_call_operand.vmem [shape: f32[1,128], index: 4, kind: input, shape index: {}]   ;;  %s2122_s5 = inlined_call_operand.vmem [shape: f32[256,128], index: 5, kind: output, shape index: {}]  }
   0x1   :  { %s1718_s20 = smov 0  }
   0x2 LB: > { %s27_s21 = sadd.s32 1, %s1677_s19  ;;  %p1346_p0 = scmp.ge.s32.totalorder %s1681_s20, 1  ;;  %s1681_s20 = sphi %s1718_s20, %s15_s20   ;;  %s1677_s19 = sphi %s1716_s19, %s2124_s19   ;;  %s1673_s18 = sphi %s1714_s18, %s2123_s18  }
   0x3   : > { %p29_p1 = scmp.ge.s32.totalorder %s27_s21, 2  ;;  %p219_p2 = scmp.lt.s32.totalorder %s1681_s20, 3 }
   0x5   : > { %s2126_s21 = smov (%p29_p1, %s27_s21), 0  ;;  %p220_p3 = pnand %p1346_p0, %p219_p2 }
   0x6   : > { %s1347_s24 = sshll.u32 (!%p220_p3), %s1673_s18, 2  ;;  %s1350_s8 = sshll.u32 (!%p220_p3), %s1673_s18, 4 }
   0x7   : > { %223 = sbr.rel (%p220_p3) target bundleno = 825 (0x339), region = 40  ;;  %p259_p4 = scmp.lt.s32.totalorder (!%p220_p3), %s1347_s24, 7 }
   0x8   : > { %p270_p5 = scmp.lt.s32.totalorder (!%p220_p3), %s1350_s8, 31  ;;  %s1370_s11 = sshll.u32 (!%p220_p3), %s1673_s18, 7 }
   0x9   : > { %s744_s14 = sshra.s32 (!%p220_p3), %s1370_s11, 3 }
   0xa   : > { %s1371_s17 = sshll.u32 (!%p220_p3), %s744_s14, 2 }
   0xb   : > { %s1875_s27 = scalar_lea.vmem (!%p220_p3), %s2118_s1, %s1371_s17 }
   0xc   : > { %v1555_v0 = vld [vmem:[%s2118_s1 + $0x78] sm:$0xff]   ;;  %v1557_v2 = vld [vmem:[%s2118_s1 + $0x70] sm:$0xff]   ;;  %v1683_v4 = vmov 0   ;;  %v1559_v5 = vld [vmem:[%s2118_s1 + $0x68] sm:$0xff]   ;;  %s2128_s24 = smov (!%p259_p4, %s1347_s24), 7  ;;  %s2130_s8 = smov (!%p270_p5, %s1350_s8), 31 }
   0xd   : > { %v1556_v1 = vld [vmem:[%s2118_s1 + $0x38] sm:$0xff]   ;;  %1400 = vmatprep.subr.bf16.mxu0 %v1555_v0  ;;  %v1558_v3 = vld [vmem:[%s2118_s1 + $0x30] sm:$0xff]   ;;  %1553 = vset.pattern.permute.xlu0 %v1683_v4  ;;  %v1560_v6 = vld [vmem:[%s2118_s1 + $0x28] sm:$0xff]   ;;  %s1399_s13 = sshll.u32 %s2128_s24, 4  ;;  %s1351_s22 = sshll.u32 %s2130_s8, 3 }
   0xe   : > { %1401 = vmatpush3.bf16.msra.mxu0 %v1556_v1  ;;  %1554 = vset.pattern.permute.xlu1 %v1683_v4  ;;  %v1561_v7 = vld [vmem:[%s2118_s1 + $0x60] sm:$0xff]   ;;  %v1563_v9 = vld [vmem:[%s2118_s1 + $0x58] sm:$0xff]   ;;  %s1769_s26 = scalar_lea.vmem %s2117_s0, %s1399_s13  ;;  %s1779_s30 = scalar_lea.vmem %s2119_s2, %s1351_s22  ;;  %v1565_v11 = vld [vmem:[%s2118_s1 + $0x50] sm:$0xff]  }
   0xf   : > { %1402 = vmatprep.subr.bf16.mxu0 %v1557_v2  ;;  %v1562_v8 = vld [vmem:[%s2118_s1 + $0x20] sm:$0xff]   ;;  %v1564_v10 = vld [vmem:[%s2118_s1 + $0x18] sm:$0xff]   ;;  %v304_v12 = vld [vmem:[%s1769_s26 + $0x8] sm:$0xff]  ;;  %s2059_s29 = scalar_lea.vmem %s2122_s5, %s1351_s22 }
  0x10   : > { %v312_v13 = vunpack.c.l.s8.bf16 %v304_v12  ;;  %v623_v14 = vld [vmem:[%s1779_s30] sm:$0xff]  ;;  %v1566_v15 = vld [vmem:[%s2118_s1 + $0x10] sm:$0xff]   ;;  %v1567_v17 = vld [vmem:[%s2118_s1 + $0x48] sm:$0xff]   ;;  %v314_v34 = vunpack.c.h.s8.bf16 %v304_v12 }
  0x11   : > { %v625_v16 = vld [vmem:[%s1779_s30 + $0x10] sm:$0xff]  ;;  %641 = vperm.xlu0 %1553, %v623_v14   ;;  %v624_v18 = vld [vmem:[%s1779_s30 + $0x8] sm:$0xff]  ;;  %v626_v19 = vld [vmem:[%s1779_s30 + $0x18] sm:$0xff] }
  0x12   : > { %1403 = vmatpush3.bf16.msra.mxu0 %v1558_v3  ;;  %507 = vmatprep.mubr.bf16.mxu0 %v312_v13  ;;  %v1568_v20 = vld [vmem:[%s2118_s1 + $0x8] sm:$0xff]   ;;  %v1569_v21 = vld [vmem:[%s2118_s1 + $0x40] sm:$0xff]   ;;  %v1571_v24 = vld [vmem:[%s2120_s3 + $0x78] sm:$0xff]  }
  0x13   : > { %1404 = vmatprep.subr.bf16.mxu0 %v1559_v5  ;;  %651 = vperm.xlu1 %1554, %v625_v16   ;;  %v627_v22 = vld [vmem:[%s1779_s30 + $0x20] sm:$0xff]  ;;  %v628_v23 = vld [vmem:[%s1779_s30 + $0x28] sm:$0xff]  ;;  %v1572_v27 = vld [vmem:[%s2120_s3 + $0x38] sm:$0xff]  }
  0x14   : > { %v1570_v25 = vld [vmem:[%s2118_s1] sm:$0xff]   ;;  %1464 = vmatprep.subr.bf16.mxu1 %v1571_v24  ;;  %v1573_v28 = vld [vmem:[%s2120_s3 + $0x70] sm:$0xff]   ;;  %v1575_v31 = vld [vmem:[%s2120_s3 + $0x68] sm:$0xff]  }
  0x15   : > { %646 = vperm.xlu0 %1553, %v624_v18   ;;  %v303_v26 = vld [vmem:[%s1769_s26] sm:$0xff]  ;;  %v629_v29 = vld [vmem:[%s1779_s30 + $0x30] sm:$0xff]  ;;  %1465 = vmatpush3.bf16.msra.mxu1 %v1572_v27  ;;  %v630_v32 = vld [vmem:[%s1779_s30 + $0x38] sm:$0xff] }
  0x16   : > { %1405 = vmatpush3.bf16.msra.mxu0 %v1560_v6  ;;  %v1574_v30 = vld [vmem:[%s2120_s3 + $0x30] sm:$0xff]   ;;  %1466 = vmatprep.subr.bf16.mxu1 %v1573_v28  ;;  %v311_v33 = vunpack.c.l.s8.bf16 %v303_v26  ;;  %v631_v35 = vld [vmem:[%s1779_s30 + $0x40] sm:$0xff]  ;;  %v1576_v36 = vld [vmem:[%s2120_s3 + $0x28] sm:$0xff]   ;;  %v313_v43 = vunpack.c.h.s8.bf16 %v303_v26 }
  0x17   : > { %1406 = vmatprep.subr.bf16.mxu0 %v1561_v7  ;;  %656 = vperm.xlu1 %1554, %v626_v19   ;;  %v1577_v37 = vld [vmem:[%s2120_s3 + $0x60] sm:$0xff]   ;;  %v632_v38 = vld [vmem:[%s1779_s30 + $0x48] sm:$0xff]  ;;  %v306_v39 = vld [vmem:[%s1769_s26 + $0x18] sm:$0xff] }
  0x18   : > { %v633_v40 = vld [vmem:[%s1779_s30 + $0x50] sm:$0xff]  ;;  %v1578_v41 = vld [vmem:[%s2120_s3 + $0x20] sm:$0xff]   ;;  %v1579_v42 = vld [vmem:[%s2120_s3 + $0x58] sm:$0xff]   ;;  %v316_v45 = vunpack.c.l.s8.bf16 %v306_v39  ;;  %v318_v53 = vunpack.c.h.s8.bf16 %v306_v39 }
  0x19   : > { %661 = vperm.xlu0 %1553, %v627_v22   ;;  %1467 = vmatpush3.bf16.msra.mxu1 %v1574_v30  ;;  %v634_v44 = vld [vmem:[%s1779_s30 + $0x58] sm:$0xff]  ;;  %v635_v47 = vld [vmem:[%s1779_s30 + $0x60] sm:$0xff]  ;;  %v636_v48 = vld [vmem:[%s1779_s30 + $0x68] sm:$0xff] }
  0x1a   : > { %1407 = vmatpush3.bf16.msra.mxu0 %v1562_v8  ;;  %1468 = vmatprep.subr.bf16.mxu1 %v1575_v31  ;;  %v1580_v46 = vld [vmem:[%s2120_s3 + $0x18] sm:$0xff]   ;;  %v305_v49 = vld [vmem:[%s1769_s26 + $0x10] sm:$0xff]  ;;  %v308_v54 = vld [vmem:[%s1769_s26 + $0x28] sm:$0xff] }
  0x1b   : > { %1408 = vmatprep.subr.bf16.mxu0 %v1563_v9  ;;  %666 = vperm.xlu1 %1554, %v628_v23   ;;  %v637_v50 = vld [vmem:[%s1779_s30 + $0x70] sm:$0xff]  ;;  %v315_v51 = vunpack.c.l.s8.bf16 %v305_v49  ;;  %v638_v52 = vld [vmem:[%s1779_s30 + $0x78] sm:$0xff]  ;;  %v317_v55 = vunpack.c.h.s8.bf16 %v305_v49  ;;  %v320_v56 = vunpack.c.l.s8.bf16 %v308_v54  ;;  %v307_v57 = vld [vmem:[%s1769_s26 + $0x20] sm:$0xff]  ;;  %v322_v59 = vunpack.c.h.s8.bf16 %v308_v54 }
  0x1c   : > { %v319_v58 = vunpack.c.l.s8.bf16 %v307_v57  ;;  %v310_v60 = vld [vmem:[%s1769_s26 + $0x38] sm:$0xff]  ;;  %v321_v61 = vunpack.c.h.s8.bf16 %v307_v57  ;;  %v309_v63 = vld [vmem:[%s1769_s26 + $0x30] sm:$0xff]  ;;  %v1583_v5 = vld [vmem:[%s2120_s3 + $0x48] sm:$0xff]  }
  0x1d   : > { %671 = vperm.xlu0 %1553, %v629_v29   ;;  %1469 = vmatpush3.bf16.msra.mxu1 %v1576_v36  ;;  %v324_v62 = vunpack.c.l.s8.bf16 %v310_v60  ;;  %v323_v0 = vunpack.c.l.s8.bf16 %v309_v63  ;;  %v326_v1 = vunpack.c.h.s8.bf16 %v310_v60  ;;  %v325_v2 = vunpack.c.h.s8.bf16 %v309_v63  ;;  %v1581_v3 = vld [vmem:[%s2120_s3 + $0x50] sm:$0xff]   ;;  %v1584_v6 = vld [vmem:[%s2120_s3 + $0x8] sm:$0xff]   ;;  %v1585_v7 = vld [vmem:[%s2120_s3 + $0x40] sm:$0xff]  }
  0x1e   : > { %1409 = vmatpush3.bf16.msra.mxu0 %v1564_v10  ;;  %1470 = vmatprep.subr.bf16.mxu1 %v1577_v37  ;;  %v1582_v4 = vld [vmem:[%s2120_s3 + $0x10] sm:$0xff]   ;;  %v1586_v8 = vld [vmem:[%s2120_s3] sm:$0xff]   ;;  %v1588_v23 = vld [vmem:[%s1875_s27 + $0x8] sm:$0xff]  }
  0x1f   : > { %1410 = vmatprep.subr.bf16.mxu0 %v1565_v11  ;;  %676 = vperm.xlu1 %1554, %v630_v32   ;;  %v1587_v9 = vld [vmem:[%s1875_s27] sm:$0xff]  }
  0x20   : > { %979 = vmatprep.mubr.bf16.mxu1 %v1587_v9 }
  0x21   : > { %681 = vperm.xlu0 %1553, %v631_v35   ;;  %1471 = vmatpush3.bf16.msra.mxu1 %v1578_v41 }
  0x22   : > { %1411 = vmatpush3.bf16.msra.mxu0 %v1566_v15  ;;  %1472 = vmatprep.subr.bf16.mxu1 %v1579_v42 }
  0x23   : > { %1412 = vmatprep.subr.bf16.mxu0 %v1567_v17  ;;  %686 = vperm.xlu1 %1554, %v632_v38  }
  0x25   : > { %691 = vperm.xlu0 %1553, %v633_v40   ;;  %1473 = vmatpush3.bf16.msra.mxu1 %v1580_v46  ;;  %v1590_v46 = vld [vmem:[%s1875_s27 + $0x18] sm:$0xff]  }
  0x26   : > { %1413 = vmatpush3.bf16.msra.mxu0 %v1568_v20  ;;  %1474 = vmatprep.subr.bf16.mxu1 %v1581_v3 }
  0x27   : > { %1414 = vmatprep.subr.bf16.mxu0 %v1569_v21  ;;  %696 = vperm.xlu1 %1554, %v634_v44  }
  0x29   : > { %701 = vperm.xlu0 %1553, %v635_v47   ;;  %1475 = vmatpush3.bf16.msra.mxu1 %v1582_v4 }
  0x2a   : > { %1415 = vmatpush3.bf16.msra.mxu0 %v1570_v25  ;;  %1476 = vmatprep.subr.bf16.mxu1 %v1583_v5 }
  0x2b   : > { %706 = vperm.xlu1 %1554, %v636_v48  }
  0x2d   : > { %508 = vmatmul.mubr.bf16.vlgmr.msra.gmra.mxu0 %v311_v33  ;;  %711 = vperm.xlu0 %1553, %v637_v50  }
  0x2e   : > { %515 = vmatprep.mubr.bf16.mxu0 %v314_v34  ;;  %1477 = vmatpush3.bf16.msra.mxu1 %v1584_v6  ;;  %v1589_v34 = vld [vmem:[%s1875_s27 + $0x10] sm:$0xff]   ;;  %v1592_v6 = vld [vmem:[%s1875_s27 + $0x28] sm:$0xff]  }
  0x2f   : > { %716 = vperm.xlu1 %1554, %v638_v52   ;;  %1478 = vmatprep.subr.bf16.mxu1 %v1585_v7 }
  0x32   : > { %1479 = vmatpush3.bf16.msra.mxu1 %v1586_v8 }
  0x35   : > { %516 = vmatmul.mubr.bf16.gmra.mxu0 %v313_v43 }
  0x36   : > { %523 = vmatprep.mubr.bf16.mxu0 %v316_v45 }
  0x3d   : > { %524 = vmatmul.mubr.bf16.gmra.mxu0 %v315_v51 }
  0x3e   : > { %531 = vmatprep.mubr.bf16.mxu0 %v318_v53 }
  0x45   : > { %532 = vmatmul.mubr.bf16.gmra.mxu0 %v317_v55 }
  0x46   : > { %539 = vmatprep.mubr.bf16.mxu0 %v320_v56 }
  0x4d   : > { %540 = vmatmul.mubr.bf16.gmra.mxu0 %v319_v58  ;;  %v1591_v58 = vld [vmem:[%s1875_s27 + $0x20] sm:$0xff]  }
  0x4e   : > { %547 = vmatprep.mubr.bf16.mxu0 %v322_v59 }
  0x55   : > { %548 = vmatmul.mubr.bf16.gmra.mxu0 %v321_v61 }
  0x56   : > { %555 = vmatprep.mubr.bf16.mxu0 %v324_v62 }
  0x5d   : > { %556 = vmatmul.mubr.bf16.gmra.mxu0 %v323_v0 }
  0x5e   : > { %563 = vmatprep.mubr.bf16.mxu0 %v326_v1 }
  0x65   : > { %564 = vmatmul.mubr.bf16.gmra.mxu0 %v325_v2 }
  0x8c   : > { %v642_v11 = vpop.permute.xlu0 %641 }
  0x8e   : > { %v652_v21 = vpop.permute.xlu1 %651 }
  0x90   : > { %v647_v17 = vpop.permute.xlu0 %646 }
  0x92   : > { %v657_v29 = vpop.permute.xlu1 %656 }
  0x94   : > { %v662_v39 = vpop.permute.xlu0 %661 }
  0x96   : > { %v667_v41 = vpop.permute.xlu1 %666 }
  0x98   : > { %v672_v51 = vpop.permute.xlu0 %671 }
  0x9a   : > { %v677_v53 = vpop.permute.xlu1 %676 }
  0x9c   : > { %v682_v63 = vpop.permute.xlu0 %681 }
  0x9e   : > { %v687_v1 = vpop.permute.xlu1 %686 }
  0xed   : > { %v1416_v10 = vpop.f32.mrf.mxu0 }
  0xef   : > { %v1417_v12 = vpop.f32.mrf.mxu0 }
  0xf0   : > { %v1418_v14 = vadd.f32 %v1417_v12, %v1416_v10 }
  0xf1   : > { %v1419_v13 = vpop.f32.mrf.mxu0 }
  0xf2   : > { %v719_v19 = vmul.f32 %v1418_v14, %v642_v11  ;;  %v692_v11 = vpop.permute.xlu0 %691 }
  0xf3   : > { %v1420_v15 = vpop.f32.mrf.mxu0 }
  0xf4   : > { %v1421_v16 = vadd.f32 %v1420_v15, %v1419_v13  ;;  %v697_v13 = vpop.permute.xlu1 %696 }
  0xf5   : > { %v1422_v18 = vpop.f32.mrf.mxu0 }
  0xf6   : > { %v720_v20 = vmul.f32 %v1421_v16, %v647_v17 }
  0xf7   : > { %v1423_v22 = vpop.f32.mrf.mxu0 }
  0xf8   : > { %v735_v24 = vpack.c.bf16 %v720_v20, %v719_v19  ;;  %v1424_v26 = vadd.f32 %v1423_v22, %v1422_v18  ;;  %v1593_v18 = vld [vmem:[%s1875_s27 + $0x30] sm:$0xff]  }
  0xf9   : > { %v1425_v25 = vpop.f32.mrf.mxu0 }
  0xfa   : > { %980 = vmatmul.mubr.bf16.vlgmr.msra.gmra.mxu1 %v735_v24  ;;  %v721_v31 = vmul.f32 %v1424_v26, %v652_v21 }
  0xfb   : > { %v1426_v27 = vpop.f32.mrf.mxu0  ;;  %987 = vmatprep.mubr.bf16.mxu1 %v1588_v23  ;;  %v702_v23 = vpop.permute.xlu0 %701 }
  0xfc   : > { %v1427_v28 = vadd.f32 %v1426_v27, %v1425_v25  ;;  %v707_v25 = vpop.permute.xlu1 %706 }
  0xfd   : > { %v1428_v30 = vpop.f32.mrf.mxu0 }
  0xfe   : > { %v722_v32 = vmul.f32 %v1427_v28, %v657_v29 }
  0xff   : > { %v1429_v33 = vpop.f32.mrf.mxu0 }
 0x100   : > { %v736_v35 = vpack.c.bf16 %v722_v32, %v721_v31  ;;  %v1430_v37 = vadd.f32 %v1429_v33, %v1428_v30  ;;  %v1594_v30 = vld [vmem:[%s1875_s27 + $0x38] sm:$0xff]  }
 0x101   : > { %v1431_v36 = vpop.f32.mrf.mxu0 }
 0x102   : > { %988 = vmatmul.mubr.bf16.gmra.mxu1 %v736_v35  ;;  %v723_v43 = vmul.f32 %v1430_v37, %v662_v39  ;;  %v717_v37 = vpop.permute.xlu1 %716 }
 0x103   : > { %v1432_v38 = vpop.f32.mrf.mxu0  ;;  %995 = vmatprep.mubr.bf16.mxu1 %v1589_v34 }
 0x104   : > { %v1433_v40 = vadd.f32 %v1432_v38, %v1431_v36  ;;  %v712_v36 = vpop.permute.xlu0 %711 }
 0x105   : > { %v1434_v42 = vpop.f32.mrf.mxu0 }
 0x106   : > { %v724_v44 = vmul.f32 %v1433_v40, %v667_v41  ;;  %v1044_v41 = vlaneseq }
 0x107   : > { %v1435_v45 = vpop.f32.mrf.mxu0 }
 0x108   : > { %v737_v47 = vpack.c.bf16 %v724_v44, %v723_v43  ;;  %v1436_v49 = vadd.f32 %v1435_v45, %v1434_v42  ;;  %v1885_v43 = vand.u32 127, %v1044_v41  ;;  %v1890_v44 = vld [vmem:[%s2121_s4] ss:$0 sm:$0xff] }
 0x109   : > { %v1437_v48 = vpop.f32.mrf.mxu0 }
 0x10a   : > { %996 = vmatmul.mubr.bf16.gmra.mxu1 %v737_v47  ;;  %v725_v55 = vmul.f32 %v1436_v49, %v672_v51  ;;  %vm1046_vm0 = vcmp.lt.s32.totalorder %v1885_v43, 8 }
 0x10b   : > { %v1438_v50 = vpop.f32.mrf.mxu0  ;;  %1003 = vmatprep.mubr.bf16.mxu1 %v1590_v46 }
 0x10c   : > { %v1439_v52 = vadd.f32 %v1438_v50, %v1437_v48 }
 0x10d   : > { %v1440_v54 = vpop.f32.mrf.mxu0 }
 0x10e   : > { %v726_v56 = vmul.f32 %v1439_v52, %v677_v53 }
 0x10f   : > { %v1441_v57 = vpop.f32.mrf.mxu0 }
 0x110   : > { %v738_v59 = vpack.c.bf16 %v726_v56, %v725_v55  ;;  %v1442_v61 = vadd.f32 %v1441_v57, %v1440_v54 }
 0x111   : > { %v1443_v60 = vpop.f32.mrf.mxu0 }
 0x112   : > { %1004 = vmatmul.mubr.bf16.gmra.mxu1 %v738_v59  ;;  %v727_v3 = vmul.f32 %v1442_v61, %v682_v63 }
 0x113   : > { %v1444_v62 = vpop.f32.mrf.mxu0  ;;  %1011 = vmatprep.mubr.bf16.mxu1 %v1591_v58 }
 0x114   : > { %v1445_v0 = vadd.f32 %v1444_v62, %v1443_v60 }
 0x115   : > { %v1446_v2 = vpop.f32.mrf.mxu0 }
 0x116   : > { %v728_v4 = vmul.f32 %v1445_v0, %v687_v1 }
 0x117   : > { %v1447_v5 = vpop.f32.mrf.mxu0 }
 0x118   : > { %v739_v7 = vpack.c.bf16 %v728_v4, %v727_v3  ;;  %v1448_v9 = vadd.f32 %v1447_v5, %v1446_v2 }
 0x119   : > { %v1449_v8 = vpop.f32.mrf.mxu0 }
 0x11a   : > { %1012 = vmatmul.mubr.bf16.gmra.mxu1 %v739_v7  ;;  %v729_v15 = vmul.f32 %v1448_v9, %v692_v11 }
 0x11b   : > { %v1450_v10 = vpop.f32.mrf.mxu0  ;;  %1019 = vmatprep.mubr.bf16.mxu1 %v1592_v6 }
 0x11c   : > { %v1451_v12 = vadd.f32 %v1450_v10, %v1449_v8 }
 0x11d   : > { %v1452_v14 = vpop.f32.mrf.mxu0 }
 0x11e   : > { %v730_v16 = vmul.f32 %v1451_v12, %v697_v13 }
 0x11f   : > { %v1453_v17 = vpop.f32.mrf.mxu0 }
 0x120   : > { %v740_v19 = vpack.c.bf16 %v730_v16, %v729_v15  ;;  %v1454_v21 = vadd.f32 %v1453_v17, %v1452_v14 }
 0x121   : > { %v1455_v20 = vpop.f32.mrf.mxu0 }
 0x122   : > { %1020 = vmatmul.mubr.bf16.gmra.mxu1 %v740_v19  ;;  %v731_v27 = vmul.f32 %v1454_v21, %v702_v23 }
 0x123   : > { %v1456_v22 = vpop.f32.mrf.mxu0  ;;  %1027 = vmatprep.mubr.bf16.mxu1 %v1593_v18 }
 0x124   : > { %v1457_v24 = vadd.f32 %v1456_v22, %v1455_v20 }
 0x125   : > { %v1458_v26 = vpop.f32.mrf.mxu0 }
 0x126   : > { %v732_v28 = vmul.f32 %v1457_v24, %v707_v25 }
 0x127   : > { %v1459_v29 = vpop.f32.mrf.mxu0 }
 0x128   : > { %v741_v31 = vpack.c.bf16 %v732_v28, %v731_v27  ;;  %v1460_v33 = vadd.f32 %v1459_v29, %v1458_v26 }
 0x129   : > { %v1461_v32 = vpop.f32.mrf.mxu0 }
 0x12a   : > { %1028 = vmatmul.mubr.bf16.gmra.mxu1 %v741_v31  ;;  %v733_v38 = vmul.f32 %v1460_v33, %v712_v36 }
 0x12b   : > { %v1462_v34 = vpop.f32.mrf.mxu0  ;;  %1035 = vmatprep.mubr.bf16.mxu1 %v1594_v30 }
 0x12c   : > { %v1463_v35 = vadd.f32 %v1462_v34, %v1461_v32 }
 0x12e   : > { %v734_v39 = vmul.f32 %v1463_v35, %v717_v37 }
 0x130   : > { %v742_v40 = vpack.c.bf16 %v734_v39, %v733_v38 }
 0x132   : > { %1036 = vmatmul.mubr.bf16.gmra.mxu1 %v742_v40 }
 0x1ba   : > { %v1480_v42 = vpop.f32.mrf.mxu1 }
 0x1bc   : > { %v1481_v45 = vpop.f32.mrf.mxu1 }
 0x1bd   : > { %v1482_v46 = vadd.f32 %v1481_v45, %v1480_v42 }
 0x1be   : > { %v1483_v47 = vpop.f32.mrf.mxu1 }
 0x1bf   : > { %v982_v48 = vadd.f32 %v1482_v46, %v1890_v44 }
 0x1c0   : > { %v1484_v49 = vpop.f32.mrf.mxu1 }
 0x1c1   : > { %v1485_v50 = vadd.f32 %v1484_v49, %v1483_v47  ;;  %v1896_v51 = vsel %vm1046_vm0, %v982_v48, -1e+30 }
 0x1c2   : > { %v1486_v52 = vpop.f32.mrf.mxu1  ;;  %1063 = vmax.xlane.f32.xlu0 %v1896_v51 }
 0x1c3   : > { %v985_v53 = vadd.f32 %v1485_v50, %v1890_v44 }
 0x1c4   : > { %v1487_v54 = vpop.f32.mrf.mxu1 }
 0x1c5   : > { %v1488_v55 = vadd.f32 %v1487_v54, %v1486_v52  ;;  %v1902_v56 = vsel %vm1046_vm0, %v985_v53, -1e+30 }
 0x1c6   : > { %v1489_v57 = vpop.f32.mrf.mxu1  ;;  %1065 = vmax.xlane.f32.xlu1 %v1902_v56 }
 0x1c7   : > { %v990_v58 = vadd.f32 %v1488_v55, %v1890_v44 }
 0x1c8   : > { %v1490_v59 = vpop.f32.mrf.mxu1 }
 0x1c9   : > { %v1491_v60 = vadd.f32 %v1490_v59, %v1489_v57  ;;  %v1908_v61 = vsel %vm1046_vm0, %v990_v58, -1e+30 }
 0x1ca   : > { %v1492_v62 = vpop.f32.mrf.mxu1  ;;  %1067 = vmax.xlane.f32.xlu0 %v1908_v61 }
 0x1cb   : > { %v993_v63 = vadd.f32 %v1491_v60, %v1890_v44 }
 0x1cc   : > { %v1493_v0 = vpop.f32.mrf.mxu1 }
 0x1cd   : > { %v1494_v1 = vadd.f32 %v1493_v0, %v1492_v62  ;;  %v1914_v2 = vsel %vm1046_vm0, %v993_v63, -1e+30 }
 0x1ce   : > { %v1495_v3 = vpop.f32.mrf.mxu1  ;;  %1069 = vmax.xlane.f32.xlu0 %v1914_v2 }
 0x1cf   : > { %v998_v4 = vadd.f32 %v1494_v1, %v1890_v44 }
 0x1d0   : > { %v1496_v5 = vpop.f32.mrf.mxu1 }
 0x1d1   : > { %v1497_v6 = vadd.f32 %v1496_v5, %v1495_v3  ;;  %v1920_v7 = vsel %vm1046_vm0, %v998_v4, -1e+30 }
 0x1d2   : > { %v1498_v8 = vpop.f32.mrf.mxu1  ;;  %1071 = vmax.xlane.f32.xlu1 %v1920_v7 }
 0x1d3   : > { %v1001_v9 = vadd.f32 %v1497_v6, %v1890_v44 }
 0x1d4   : > { %v1499_v10 = vpop.f32.mrf.mxu1 }
 0x1d5   : > { %v1500_v11 = vadd.f32 %v1499_v10, %v1498_v8  ;;  %v1926_v12 = vsel %vm1046_vm0, %v1001_v9, -1e+30 }
 0x1d6   : > { %v1501_v13 = vpop.f32.mrf.mxu1  ;;  %1073 = vmax.xlane.f32.xlu0 %v1926_v12 }
 0x1d7   : > { %v1006_v14 = vadd.f32 %v1500_v11, %v1890_v44 }
 0x1d8   : > { %v1502_v15 = vpop.f32.mrf.mxu1 }
 0x1d9   : > { %v1503_v16 = vadd.f32 %v1502_v15, %v1501_v13  ;;  %v1932_v17 = vsel %vm1046_vm0, %v1006_v14, -1e+30 }
 0x1da   : > { %v1504_v18 = vpop.f32.mrf.mxu1  ;;  %1075 = vmax.xlane.f32.xlu1 %v1932_v17 }
 0x1db   : > { %v1009_v19 = vadd.f32 %v1503_v16, %v1890_v44 }
 0x1dc   : > { %v1505_v20 = vpop.f32.mrf.mxu1 }
 0x1dd   : > { %v1506_v21 = vadd.f32 %v1505_v20, %v1504_v18  ;;  %v1938_v22 = vsel %vm1046_vm0, %v1009_v19, -1e+30 }
 0x1de   : > { %v1507_v23 = vpop.f32.mrf.mxu1  ;;  %1077 = vmax.xlane.f32.xlu0 %v1938_v22 }
 0x1df   : > { %v1014_v24 = vadd.f32 %v1506_v21, %v1890_v44 }
 0x1e0   : > { %v1508_v25 = vpop.f32.mrf.mxu1 }
 0x1e1   : > { %v1509_v26 = vadd.f32 %v1508_v25, %v1507_v23  ;;  %v1944_v27 = vsel %vm1046_vm0, %v1014_v24, -1e+30 }
 0x1e2   : > { %v1510_v28 = vpop.f32.mrf.mxu1  ;;  %1079 = vmax.xlane.f32.xlu1 %v1944_v27 }
 0x1e3   : > { %v1017_v29 = vadd.f32 %v1509_v26, %v1890_v44 }
 0x1e4   : > { %v1511_v30 = vpop.f32.mrf.mxu1 }
 0x1e5   : > { %v1512_v31 = vadd.f32 %v1511_v30, %v1510_v28  ;;  %v1950_v32 = vsel %vm1046_vm0, %v1017_v29, -1e+30 }
 0x1e6   : > { %v1513_v33 = vpop.f32.mrf.mxu1  ;;  %1081 = vmax.xlane.f32.xlu0 %v1950_v32 }
 0x1e7   : > { %v1022_v34 = vadd.f32 %v1512_v31, %v1890_v44 }
 0x1e8   : > { %v1514_v35 = vpop.f32.mrf.mxu1 }
 0x1e9   : > { %v1515_v36 = vadd.f32 %v1514_v35, %v1513_v33  ;;  %v1956_v37 = vsel %vm1046_vm0, %v1022_v34, -1e+30 }
 0x1ea   : > { %v1516_v38 = vpop.f32.mrf.mxu1  ;;  %1083 = vmax.xlane.f32.xlu1 %v1956_v37 }
 0x1eb   : > { %v1025_v39 = vadd.f32 %v1515_v36, %v1890_v44 }
 0x1ec   : > { %v1517_v40 = vpop.f32.mrf.mxu1 }
 0x1ed   : > { %v1518_v41 = vadd.f32 %v1517_v40, %v1516_v38  ;;  %v1962_v42 = vsel %vm1046_vm0, %v1025_v39, -1e+30 }
 0x1ee   : > { %v1519_v45 = vpop.f32.mrf.mxu1  ;;  %1085 = vmax.xlane.f32.xlu0 %v1962_v42 }
 0x1ef   : > { %v1030_v46 = vadd.f32 %v1518_v41, %v1890_v44 }
 0x1f0   : > { %v1520_v47 = vpop.f32.mrf.mxu1 }
 0x1f1   : > { %v1521_v48 = vadd.f32 %v1520_v47, %v1519_v45  ;;  %v1968_v49 = vsel %vm1046_vm0, %v1030_v46, -1e+30 }
 0x1f2   : > { %v1522_v50 = vpop.f32.mrf.mxu1  ;;  %1087 = vmax.xlane.f32.xlu1 %v1968_v49 }
 0x1f3   : > { %v1033_v52 = vadd.f32 %v1521_v48, %v1890_v44 }
 0x1f4   : > { %v1523_v53 = vpop.f32.mrf.mxu1 }
 0x1f5   : > { %v1524_v54 = vadd.f32 %v1523_v53, %v1522_v50  ;;  %v1974_v55 = vsel %vm1046_vm0, %v1033_v52, -1e+30 }
 0x1f6   : > { %v1525_v57 = vpop.f32.mrf.mxu1  ;;  %1089 = vmax.xlane.f32.xlu0 %v1974_v55 }
 0x1f7   : > { %v1038_v58 = vadd.f32 %v1524_v54, %v1890_v44 }
 0x1f8   : > { %v1526_v59 = vpop.f32.mrf.mxu1 }
 0x1f9   : > { %v1527_v60 = vadd.f32 %v1526_v59, %v1525_v57  ;;  %v1980_v62 = vsel %vm1046_vm0, %v1038_v58, -1e+30 }
 0x1fa   : > { %1091 = vmax.xlane.f32.xlu1 %v1980_v62 }
 0x1fb   : > { %v1041_v63 = vadd.f32 %v1527_v60, %v1890_v44 }
 0x1fd   : > { %v1986_v0 = vsel %vm1046_vm0, %v1041_v63, -1e+30 }
 0x1fe   : > { %1093 = vmax.xlane.f32.xlu0 %v1986_v0 }
 0x24b   : > { %v1989_v1 = vpop.xlane.xlu0 %1063 }
 0x24c   : > { %v1095_v3 = vsub.f32 %v1896_v51, %v1989_v1 }
 0x24e   : > { %v1111_v4 = vmul.f32 1.442695, %v1095_v3 }
 0x24f   : > { %v1993_v5 = vpop.xlane.xlu1 %1065 }
 0x250   : > { %1595 = vpow2.f32 %v1111_v4  ;;  %v1096_v6 = vsub.f32 %v1902_v56, %v1993_v5 }
 0x252   : > { %v1113_v8 = vmul.f32 1.442695, %v1096_v6 }
 0x253   : > { %v1997_v44 = vpop.xlane.xlu0 %1067 }
 0x254   : > { %1597 = vpow2.f32 %v1113_v8  ;;  %v1097_v43 = vsub.f32 %v1908_v61, %v1997_v44 }
 0x256   : > { %v1115_v9 = vmul.f32 1.442695, %v1097_v43 }
 0x257   : > { %v2001_v10 = vpop.xlane.xlu0 %1069 }
 0x258   : > { %1599 = vpow2.f32 %v1115_v9  ;;  %v1098_v11 = vsub.f32 %v1914_v2, %v2001_v10 }
 0x25a   : > { %v1117_v13 = vmul.f32 1.442695, %v1098_v11 }
 0x25b   : > { %v2005_v14 = vpop.xlane.xlu1 %1071 }
 0x25c   : > { %1601 = vpow2.f32 %v1117_v13  ;;  %v1099_v15 = vsub.f32 %v1920_v7, %v2005_v14 }
 0x25d   : > { %v1596_v16 = vpop.eup %1595 }
 0x25e   : > { %v1119_v18 = vmul.f32 1.442695, %v1099_v15  ;;  %1143 = vadd.xlane.f32.xlu1 %v1596_v16 }
 0x25f   : > { %v2009_v19 = vpop.xlane.xlu0 %1073 }
 0x260   : > { %1603 = vpow2.f32 %v1119_v18  ;;  %v1100_v20 = vsub.f32 %v1926_v12, %v2009_v19 }
 0x261   : > { %v1598_v21 = vpop.eup %1597 }
 0x262   : > { %v1121_v23 = vmul.f32 1.442695, %v1100_v20  ;;  %1145 = vadd.xlane.f32.xlu0 %v1598_v21 }
 0x263   : > { %v2013_v24 = vpop.xlane.xlu1 %1075 }
 0x264   : > { %1605 = vpow2.f32 %v1121_v23  ;;  %v1101_v25 = vsub.f32 %v1932_v17, %v2013_v24 }
 0x265   : > { %v1600_v26 = vpop.eup %1599 }
 0x266   : > { %v1123_v28 = vmul.f32 1.442695, %v1101_v25  ;;  %1147 = vadd.xlane.f32.xlu1 %v1600_v26 }
 0x267   : > { %v2017_v29 = vpop.xlane.xlu0 %1077 }
 0x268   : > { %1607 = vpow2.f32 %v1123_v28  ;;  %v1102_v30 = vsub.f32 %v1938_v22, %v2017_v29 }
 0x269   : > { %v1602_v31 = vpop.eup %1601 }
 0x26a   : > { %v1125_v33 = vmul.f32 1.442695, %v1102_v30  ;;  %1149 = vadd.xlane.f32.xlu0 %v1602_v31 }
 0x26b   : > { %v2021_v34 = vpop.xlane.xlu1 %1079 }
 0x26c   : > { %1609 = vpow2.f32 %v1125_v33  ;;  %v1103_v35 = vsub.f32 %v1944_v27, %v2021_v34 }
 0x26d   : > { %v1604_v36 = vpop.eup %1603 }
 0x26e   : > { %v1127_v38 = vmul.f32 1.442695, %v1103_v35  ;;  %1151 = vadd.xlane.f32.xlu1 %v1604_v36 }
 0x26f   : > { %v2025_v39 = vpop.xlane.xlu0 %1081 }
 0x270   : > { %1611 = vpow2.f32 %v1127_v38  ;;  %v1104_v40 = vsub.f32 %v1950_v32, %v2025_v39 }
 0x271   : > { %v1606_v41 = vpop.eup %1605 }
 0x272   : > { %v1129_v45 = vmul.f32 1.442695, %v1104_v40  ;;  %1153 = vadd.xlane.f32.xlu0 %v1606_v41 }
 0x273   : > { %v2029_v46 = vpop.xlane.xlu1 %1083 }
 0x274   : > { %1613 = vpow2.f32 %v1129_v45  ;;  %v1105_v47 = vsub.f32 %v1956_v37, %v2029_v46 }
 0x275   : > { %v1608_v48 = vpop.eup %1607 }
 0x276   : > { %v1131_v50 = vmul.f32 1.442695, %v1105_v47  ;;  %1155 = vadd.xlane.f32.xlu1 %v1608_v48 }
 0x277   : > { %v2033_v52 = vpop.xlane.xlu0 %1085 }
 0x278   : > { %1615 = vpow2.f32 %v1131_v50  ;;  %v1106_v53 = vsub.f32 %v1962_v42, %v2033_v52 }
 0x279   : > { %v1610_v54 = vpop.eup %1609 }
 0x27a   : > { %v1133_v57 = vmul.f32 1.442695, %v1106_v53  ;;  %1157 = vadd.xlane.f32.xlu0 %v1610_v54 }
 0x27b   : > { %v2037_v58 = vpop.xlane.xlu1 %1087 }
 0x27c   : > { %1617 = vpow2.f32 %v1133_v57  ;;  %v1107_v59 = vsub.f32 %v1968_v49, %v2037_v58 }
 0x27d   : > { %v1612_v60 = vpop.eup %1611 }
 0x27e   : > { %v1135_v63 = vmul.f32 1.442695, %v1107_v59  ;;  %1159 = vadd.xlane.f32.xlu1 %v1612_v60 }
 0x27f   : > { %v2041_v3 = vpop.xlane.xlu0 %1089 }
 0x280   : > { %1619 = vpow2.f32 %v1135_v63  ;;  %v1108_v4 = vsub.f32 %v1974_v55, %v2041_v3 }
 0x281   : > { %v1614_v6 = vpop.eup %1613 }
 0x282   : > { %v1137_v8 = vmul.f32 1.442695, %v1108_v4  ;;  %1161 = vadd.xlane.f32.xlu0 %v1614_v6 }
 0x283   : > { %v2045_v43 = vpop.xlane.xlu1 %1091 }
 0x284   : > { %1621 = vpow2.f32 %v1137_v8  ;;  %v1109_v9 = vsub.f32 %v1980_v62, %v2045_v43 }
 0x285   : > { %v1616_v11 = vpop.eup %1615 }
 0x286   : > { %v1139_v13 = vmul.f32 1.442695, %v1109_v9  ;;  %1163 = vadd.xlane.f32.xlu1 %v1616_v11 }
 0x287   : > { %v2049_v15 = vpop.xlane.xlu0 %1093 }
 0x288   : > { %1623 = vpow2.f32 %v1139_v13  ;;  %v1110_v16 = vsub.f32 %v1986_v0, %v2049_v15 }
 0x289   : > { %v1618_v18 = vpop.eup %1617 }
 0x28a   : > { %v1141_v20 = vmul.f32 1.442695, %v1110_v16  ;;  %1165 = vadd.xlane.f32.xlu0 %v1618_v18 }
 0x28c   : > { %1625 = vpow2.f32 %v1141_v20 }
 0x28d   : > { %v1620_v21 = vpop.eup %1619 }
 0x28e   : > { %1167 = vadd.xlane.f32.xlu1 %v1620_v21 }
 0x291   : > { %v1622_v23 = vpop.eup %1621 }
 0x292   : > { %1169 = vadd.xlane.f32.xlu0 %v1622_v23 }
 0x295   : > { %v1624_v25 = vpop.eup %1623 }
 0x296   : > { %1171 = vadd.xlane.f32.xlu1 %v1624_v25 }
 0x299   : > { %v1626_v26 = vpop.eup %1625 }
 0x29a   : > { %1173 = vadd.xlane.f32.xlu0 %v1626_v26 }
 0x2e7   : > { %v1144_v28 = vpop.xlane.xlu1 %1143 }
 0x2e8   : > { %1627 = vlog2.f32 %v1144_v28 }
 0x2eb   : > { %v1146_v30 = vpop.xlane.xlu0 %1145 }
 0x2ec   : > { %1629 = vlog2.f32 %v1146_v30 }
 0x2ef   : > { %v1148_v31 = vpop.xlane.xlu1 %1147 }
 0x2f0   : > { %1631 = vlog2.f32 %v1148_v31 }
 0x2f3   : > { %v1150_v33 = vpop.xlane.xlu0 %1149 }
 0x2f4   : > { %1633 = vlog2.f32 %v1150_v33 }
 0x2f5   : > { %v1628_v35 = vpop.eup %1627 }
 0x2f6   : > { %v1176_v36 = vmul.f32 0.6931472, %v1628_v35 }
 0x2f7   : > { %v1152_v38 = vpop.xlane.xlu1 %1151 }
 0x2f8   : > { %v1207_v40 = vadd.f32 %v1176_v36, %v1989_v1  ;;  %1635 = vlog2.f32 %v1152_v38 }
 0x2f9   : > { %v1630_v41 = vpop.eup %1629 }
 0x2fa   : > { %v1223_v45 = vsub.f32 %v1896_v51, %v1207_v40  ;;  %v1178_v47 = vmul.f32 0.6931472, %v1630_v41 }
 0x2fb   : > { %v1154_v48 = vpop.xlane.xlu0 %1153 }
 0x2fc   : > { %1239 = vst [vmem:[%s2059_s29] sm:$0xff] %v1223_v45  ;;  %v1208_v50 = vadd.f32 %v1178_v47, %v1993_v5  ;;  %1637 = vlog2.f32 %v1154_v48 }
 0x2fd   : > { %v1632_v1 = vpop.eup %1631 }
 0x2fe   : > { %v1224_v53 = vsub.f32 %v1902_v56, %v1208_v50  ;;  %v1180_v54 = vmul.f32 0.6931472, %v1632_v1 }
 0x2ff   : > { %v1156_v57 = vpop.xlane.xlu1 %1155 }
 0x300   : > { %1240 = vst [vmem:[%s2059_s29 + $0x8] sm:$0xff] %v1224_v53  ;;  %v1209_v59 = vadd.f32 %v1180_v54, %v1997_v44  ;;  %1639 = vlog2.f32 %v1156_v57 }
 0x301   : > { %v1634_v60 = vpop.eup %1633 }
 0x302   : > { %v1225_v51 = vsub.f32 %v1908_v61, %v1209_v59  ;;  %v1182_v63 = vmul.f32 0.6931472, %v1634_v60 }
 0x303   : > { %v1158_v4 = vpop.xlane.xlu0 %1157 }
 0x304   : > { %1241 = vst [vmem:[%s2059_s29 + $0x10] sm:$0xff] %v1225_v51  ;;  %v1210_v5 = vadd.f32 %v1182_v63, %v2001_v10  ;;  %1641 = vlog2.f32 %v1158_v4 }
 0x305   : > { %v1636_v6 = vpop.eup %1635 }
 0x306   : > { %v1226_v56 = vsub.f32 %v1914_v2, %v1210_v5  ;;  %v1184_v8 = vmul.f32 0.6931472, %v1636_v6 }
 0x307   : > { %v1160_v9 = vpop.xlane.xlu1 %1159 }
 0x308   : > { %1242 = vst [vmem:[%s2059_s29 + $0x18] sm:$0xff] %v1226_v56  ;;  %v1211_v44 = vadd.f32 %v1184_v8, %v2005_v14  ;;  %1643 = vlog2.f32 %v1160_v9 }
 0x309   : > { %v1638_v11 = vpop.eup %1637 }
 0x30a   : > { %v1227_v61 = vsub.f32 %v1920_v7, %v1211_v44  ;;  %v1186_v13 = vmul.f32 0.6931472, %v1638_v11 }
 0x30b   : > { %v1162_v16 = vpop.xlane.xlu0 %1161 }
 0x30c   : > { %1243 = vst [vmem:[%s2059_s29 + $0x20] sm:$0xff] %v1227_v61  ;;  %v1212_v10 = vadd.f32 %v1186_v13, %v2009_v19  ;;  %1645 = vlog2.f32 %v1162_v16 }
 0x30d   : > { %v1640_v18 = vpop.eup %1639 }
 0x30e   : > { %v1228_v2 = vsub.f32 %v1926_v12, %v1212_v10  ;;  %v1188_v20 = vmul.f32 0.6931472, %v1640_v18 }
 0x30f   : > { %v1164_v21 = vpop.xlane.xlu1 %1163 }
 0x310   : > { %1244 = vst [vmem:[%s2059_s29 + $0x28] sm:$0xff] %v1228_v2  ;;  %v1213_v14 = vadd.f32 %v1188_v20, %v2013_v24  ;;  %1647 = vlog2.f32 %v1164_v21 }
 0x311   : > { %v1642_v23 = vpop.eup %1641 }
 0x312   : > { %v1229_v7 = vsub.f32 %v1932_v17, %v1213_v14  ;;  %v1190_v25 = vmul.f32 0.6931472, %v1642_v23 }
 0x313   : > { %v1166_v26 = vpop.xlane.xlu0 %1165 }
 0x314   : > { %1245 = vst [vmem:[%s2059_s29 + $0x30] sm:$0xff] %v1229_v7  ;;  %v1214_v19 = vadd.f32 %v1190_v25, %v2017_v29  ;;  %1649 = vlog2.f32 %v1166_v26 }
 0x315   : > { %v1644_v28 = vpop.eup %1643 }
 0x316   : > { %v1230_v12 = vsub.f32 %v1938_v22, %v1214_v19  ;;  %v1192_v30 = vmul.f32 0.6931472, %v1644_v28 }
 0x317   : > { %v1168_v31 = vpop.xlane.xlu1 %1167 }
 0x318   : > { %1246 = vst [vmem:[%s2059_s29 + $0x38] sm:$0xff] %v1230_v12  ;;  %v1215_v24 = vadd.f32 %v1192_v30, %v2021_v34  ;;  %1651 = vlog2.f32 %v1168_v31 }
 0x319   : > { %v1646_v33 = vpop.eup %1645 }
 0x31a   : > { %v1231_v17 = vsub.f32 %v1944_v27, %v1215_v24  ;;  %v1194_v35 = vmul.f32 0.6931472, %v1646_v33 }
 0x31b   : > { %v1170_v36 = vpop.xlane.xlu0 %1169 }
 0x31c   : > { %1247 = vst [vmem:[%s2059_s29 + $0x40] sm:$0xff] %v1231_v17  ;;  %v1216_v29 = vadd.f32 %v1194_v35, %v2025_v39  ;;  %1653 = vlog2.f32 %v1170_v36 }
 0x31d   : > { %v1648_v38 = vpop.eup %1647 }
 0x31e   : > { %v1232_v22 = vsub.f32 %v1950_v32, %v1216_v29  ;;  %v1196_v40 = vmul.f32 0.6931472, %v1648_v38 }
 0x31f   : > { %v1172_v41 = vpop.xlane.xlu1 %1171 }
 0x320   : > { %1248 = vst [vmem:[%s2059_s29 + $0x48] sm:$0xff] %v1232_v22  ;;  %v1217_v34 = vadd.f32 %v1196_v40, %v2029_v46  ;;  %1655 = vlog2.f32 %v1172_v41 }
 0x321   : > { %v1650_v45 = vpop.eup %1649 }
 0x322   : > { %v1233_v27 = vsub.f32 %v1956_v37, %v1217_v34  ;;  %v1198_v47 = vmul.f32 0.6931472, %v1650_v45 }
 0x323   : > { %v1174_v48 = vpop.xlane.xlu0 %1173 }
 0x324   : > { %1249 = vst [vmem:[%s2059_s29 + $0x50] sm:$0xff] %v1233_v27  ;;  %v1218_v39 = vadd.f32 %v1198_v47, %v2033_v52  ;;  %1657 = vlog2.f32 %v1174_v48 }
 0x325   : > { %v1652_v50 = vpop.eup %1651 }
 0x326   : > { %v1234_v32 = vsub.f32 %v1962_v42, %v1218_v39  ;;  %v1200_v1 = vmul.f32 0.6931472, %v1652_v50 }
 0x328   : > { %1250 = vst [vmem:[%s2059_s29 + $0x58] sm:$0xff] %v1234_v32  ;;  %v1219_v46 = vadd.f32 %v1200_v1, %v2037_v58 }
 0x329   : > { %v1654_v53 = vpop.eup %1653 }
 0x32a   : > { %v1235_v54 = vsub.f32 %v1968_v49, %v1219_v46  ;;  %v1202_v37 = vmul.f32 0.6931472, %v1654_v53 }
 0x32c   : > { %1251 = vst [vmem:[%s2059_s29 + $0x60] sm:$0xff] %v1235_v54  ;;  %v1220_v57 = vadd.f32 %v1202_v37, %v2041_v3 }
 0x32d   : > { %v1656_v59 = vpop.eup %1655 }
 0x32e   : > { %v1236_v52 = vsub.f32 %v1974_v55, %v1220_v57  ;;  %v1204_v60 = vmul.f32 0.6931472, %v1656_v59 }
 0x330   : > { %1252 = vst [vmem:[%s2059_s29 + $0x68] sm:$0xff] %v1236_v52  ;;  %v1221_v42 = vadd.f32 %v1204_v60, %v2045_v43 }
 0x331   : > { %v1658_v51 = vpop.eup %1657 }
 0x332   : > { %v1237_v63 = vsub.f32 %v1980_v62, %v1221_v42  ;;  %v1206_v4 = vmul.f32 0.6931472, %v1658_v51 }
 0x334   : > { %1253 = vst [vmem:[%s2059_s29 + $0x70] sm:$0xff] %v1237_v63  ;;  %v1222_v58 = vadd.f32 %v1206_v4, %v2049_v15 }
 0x336   : > { %v1238_v49 = vsub.f32 %v1986_v0, %v1222_v58 }
 0x338   : > { %1254 = vst [vmem:[%s2059_s29 + $0x78] sm:$0xff] %v1238_v49 }
 0x339 PF: > { %s15_s20 = sadd.s32 1, %s1681_s20   ;;  %s2123_s18 = smov %s1677_s19 }
 0x33a   : > { %p12_p6 = scmp.ge.s32.totalorder %s15_s20, 4   ;;  %s2124_s19 = smov %s2126_s21 }
 0x33c   :  { %14 = sbr.rel (!%p12_p6) target bundleno = 2 (0x2), region = 83 }

</bundles_post_ra>
